<compile_context>
chip_gen: v7x
topology: tpu7x:2x2x1
jax: 0.10.0
libtpu: 0.0.40
codegen_flags: <defaults>
</compile_context>

<pallas_src>
import jax
import jax.numpy as jnp
from jax import lax
from jax.experimental import pallas as pl
from jax.experimental.pallas import tpu as pltpu


def _make_kernel(K):
    """Single-step kernel: two fused im2col matmuls + folded-BN shift + ReLU."""

    def kernel(xcol_ref, w1_ref, t1_ref, w2_ref, t2_ref, mask_ref,
               out_ref, hcol_ref):
        # xcol_ref : (Ntot, K*C_in)  conv1 im2col rows in band layout (+ zero rows)
        # w1_ref   : (K*C_in, H)     conv1 weight, BN1 scale folded in
        # t1_ref   : (1, H)          BN1 shift
        # w2_ref   : (K*H, C_out)    conv2 weight, BN2 scale folded in
        # t2_ref   : (1, C_out)      BN2 shift
        # mask_ref : (Ntot, 1)       1.0 on real rows, 0.0 on conv2 zero-pad rows
        # out_ref  : (Nout, C_out)   Nout = Ntot - (K-1)
        # hcol_ref : (Nout, K*H)     VMEM scratch: conv2 im2col matrix
        H = w1_ref.shape[1]
        Nout = out_ref.shape[0]

        # ---- conv1 + folded BN1 + ReLU: one 2-D MXU matmul (contraction K*C_in) ----
        h1 = jnp.dot(xcol_ref[...], w1_ref[...],
                     preferred_element_type=jnp.float32)
        # masking zeroes conv2's padding rows (band edges + tail) for free on the VPU
        hband = jnp.maximum(h1 + t1_ref[...], 0.0) * mask_ref[...]

        # ---- in-kernel im2col for conv2: K static lane-offset column writes ----
        for k in range(K):                       # static unroll, K == 8
            hcol_ref[:, k * H:(k + 1) * H] = hband[k:k + Nout, :]

        # ---- conv2 + folded BN2 + ReLU: one 2-D MXU matmul (contraction K*H) ----
        y = jnp.dot(hcol_ref[...], w2_ref[...],
                    preferred_element_type=jnp.float32)
        out_ref[...] = jnp.maximum(y + t2_ref[...], 0.0).astype(out_ref.dtype)

    return kernel


def feature_extractor_1dcnn_rul(x_in, conv1_w, bn1, conv2_w, bn2, *,
                                kernel_size=8, eps=1e-5):
    """x_in: (B, L, C_in). conv*_w: PyTorch Conv1d weights (C_out, C_in, K).
    bn* = (gamma, beta, running_mean, running_var).
    Returns (B, C_out, L_out) matching the PyTorch module in eval mode."""
    g1, be1, m1, v1 = bn1
    g2, be2, m2, v2 = bn2
    B, L, C_in = x_in.shape
    H = conv1_w.shape[0]
    C_out = conv2_w.shape[0]
    K = kernel_size
    P1, P2 = K // 2, 1                       # paddings used by the module (stride=1)
    L1 = L + 2 * P1 - K + 1
    L2 = L1 + 2 * P2 - K + 1
    assert L2 >= 1, "sequence too short for two K-tap convolutions"
    Lb = L1 + 2 * P2                         # per-example band length (conv2 input)
    Nout = B * Lb                            # rows of conv2 im2col / kernel output
    Ntot = Nout + K - 1                      # rows of the banded conv1 im2col input

    f32 = jnp.float32
    x = x_in.astype(f32)

    # ---------------- wrapper-side layout plumbing (free XLA work) ----------------
    # conv1 im2col (B, L1, K*C_in); then band layout: one zero row on each side of
    # every example (these become conv2's zero padding) plus K-1 zero tail rows so
    # the in-kernel shifted slices never run out of bounds.
    xpad = jnp.pad(x, ((0, 0), (P1, P1), (0, 0)))
    xcol = jnp.concatenate([xpad[:, k:k + L1, :] for k in range(K)], axis=-1)
    xcol = jnp.pad(xcol, ((0, 0), (P2, P2), (0, 0))).reshape(B * Lb, K * C_in)
    xcol = jnp.pad(xcol, ((0, K - 1), (0, 0)))                     # (Ntot, K*C_in)

    # 1.0 on rows holding real conv1 outputs, 0.0 on conv2 zero-padding/tail rows.
    mask = jnp.pad(jnp.ones((B, L1), f32), ((0, 0), (P2, P2))).reshape(B * Lb)
    mask = jnp.pad(mask, (0, K - 1)).reshape(Ntot, 1)

    # Fold eval-mode BN scale into the conv weights; keep only the shift.
    s1 = g1.astype(f32) / jnp.sqrt(v1.astype(f32) + eps)
    t1 = (be1.astype(f32) - m1.astype(f32) * s1).reshape(1, H)
    s2 = g2.astype(f32) / jnp.sqrt(v2.astype(f32) + eps)
    t2 = (be2.astype(f32) - m2.astype(f32) * s2).reshape(1, C_out)
    # (C_out, C_in, K) -> tap-major (K*C_in, H) / (K*H, C_out), matching im2col order.
    w1_mat = (jnp.transpose(conv1_w.astype(f32), (2, 1, 0))
              .reshape(K * C_in, H) * s1[None, :])
    w2_mat = (jnp.transpose(conv2_w.astype(f32), (2, 1, 0))
              .reshape(K * H, C_out) * s2[None, :])

    # Single grid step: the whole working set is a few hundred KB (trivially fits
    # VMEM on v5e/v6e/v7x) and extra steps would only add fixed pipeline overhead.
    y2d = pl.pallas_call(
        _make_kernel(K),
        out_shape=jax.ShapeDtypeStruct((Nout, C_out), f32),
        grid=(1,),
        in_specs=[
            pl.BlockSpec((Ntot, K * C_in), lambda i: (0, 0)),
            pl.BlockSpec((K * C_in, H), lambda i: (0, 0)),
            pl.BlockSpec((1, H), lambda i: (0, 0)),
            pl.BlockSpec((K * H, C_out), lambda i: (0, 0)),
            pl.BlockSpec((1, C_out), lambda i: (0, 0)),
            pl.BlockSpec((Ntot, 1), lambda i: (0, 0)),
        ],
        out_specs=pl.BlockSpec((Nout, C_out), lambda i: (0, 0)),
        scratch_shapes=[pltpu.VMEM((Nout, K * H), f32)],
        compiler_params=pltpu.CompilerParams(
            dimension_semantics=("arbitrary",)),
    )(xcol, w1_mat, t1, w2_mat, t2, mask)

    # Un-band: (B*Lb, C_out) -> (B, Lb, C_out), keep the L2 valid rows per example,
    # then match the PyTorch channels-first output layout.
    y = y2d.reshape(B, Lb, C_out)[:, :L2, :]
    return jnp.transpose(y, (0, 2, 1))


def _reference(x_in, conv1_w, bn1, conv2_w, bn2, *, kernel_size=8, eps=1e-5):
    g1, be1, m1, v1 = bn1
    g2, be2, m2, v2 = bn2
    K = kernel_size
    x = jnp.transpose(x_in, (0, 2, 1)).astype(jnp.float32)               # (B, C_in, L)
    y = lax.conv_general_dilated(
        x, conv1_w.astype(jnp.float32), window_strides=(1,),
        padding=[(K // 2, K // 2)], dimension_numbers=("NCH", "OIH", "NCH"),
        precision=lax.Precision.HIGHEST)
    y = (y - m1[None, :, None]) / jnp.sqrt(v1 + eps)[None, :, None] \
        * g1[None, :, None] + be1[None, :, None]
    y = jnp.maximum(y, 0.0)
    y = lax.conv_general_dilated(
        y, conv2_w.astype(jnp.float32), window_strides=(1,),
        padding=[(1, 1)], dimension_numbers=("NCH", "OIH", "NCH"),
        precision=lax.Precision.HIGHEST)
    y = (y - m2[None, :, None]) / jnp.sqrt(v2 + eps)[None, :, None] \
        * g2[None, :, None] + be2[None, :, None]
    y = jnp.maximum(y, 0.0)
    return y


if __name__ == "__main__":
    key = jax.random.PRNGKey(0)
    B, L, C_in, H, C_out, K = 8, 16, 4, 32, 32, 8

    keys = jax.random.split(key, 11)
    x_in = jax.random.normal(keys[0], (B, L, C_in), jnp.float32)
    conv1_w = jax.random.normal(keys[1], (H, C_in, K), jnp.float32) * 0.2
    conv2_w = jax.random.normal(keys[2], (C_out, H, K), jnp.float32) * 0.1
    bn1 = (jax.random.uniform(keys[3], (H,), jnp.float32, 0.5, 1.5),
           jax.random.normal(keys[4], (H,), jnp.float32) * 0.1,
           jax.random.normal(keys[5], (H,), jnp.float32) * 0.1,
           jax.random.uniform(keys[6], (H,), jnp.float32, 0.5, 1.5))
    bn2 = (jax.random.uniform(keys[7], (C_out,), jnp.float32, 0.5, 1.5),
           jax.random.normal(keys[8], (C_out,), jnp.float32) * 0.1,
           jax.random.normal(keys[9], (C_out,), jnp.float32) * 0.1,
           jax.random.uniform(keys[10], (C_out,), jnp.float32, 0.5, 1.5))

    out = feature_extractor_1dcnn_rul(x_in, conv1_w, bn1, conv2_w, bn2,
                                      kernel_size=K)
    out = jax.block_until_ready(out)

    ref = _reference(x_in, conv1_w, bn1, conv2_w, bn2, kernel_size=K)
    assert out.shape == (B, C_out, L - 4), out.shape
    assert ref.shape == out.shape
    assert jnp.allclose(out, ref, atol=1e-3, rtol=1e-3), (
        "mismatch vs reference: max abs err = %s"
        % float(jnp.max(jnp.abs(out - ref))))

    print("KERNEL_OK")
</pallas_src>

<mosaic_0001>
module attributes {stable_mosaic.version = 11 : i64} {
  func.func @kernel(%arg0: i32, %arg1: memref<159x32xf32, #tpu.memory_space<vmem>>, %arg2: memref<32x32xf32, #tpu.memory_space<vmem>>, %arg3: memref<1x32xf32, #tpu.memory_space<vmem>>, %arg4: memref<256x32xf32, #tpu.memory_space<vmem>>, %arg5: memref<1x32xf32, #tpu.memory_space<vmem>>, %arg6: memref<159x1xf32, #tpu.memory_space<vmem>>, %arg7: memref<152x32xf32, #tpu.memory_space<vmem>>, %arg8: memref<152x256xf32, #tpu.memory_space<vmem>>) attributes {dimension_semantics = [#tpu.dimension_semantics<arbitrary>], iteration_bounds = array<i64: 1>, scalar_prefetch = 0 : i64, scratch_operands = 1 : i64, tpu.core_type = #tpu.core_type<tc>, window_params = [{pipeline_mode = #tpu.pipeline_mode<synchronous>, transform_indices = @transform_0, window_bounds = array<i64: 159, 32>}, {pipeline_mode = #tpu.pipeline_mode<synchronous>, transform_indices = @transform_1, window_bounds = array<i64: 32, 32>}, {pipeline_mode = #tpu.pipeline_mode<synchronous>, transform_indices = @transform_2, window_bounds = array<i64: 1, 32>}, {pipeline_mode = #tpu.pipeline_mode<synchronous>, transform_indices = @transform_3, window_bounds = array<i64: 256, 32>}, {pipeline_mode = #tpu.pipeline_mode<synchronous>, transform_indices = @transform_4, window_bounds = array<i64: 1, 32>}, {pipeline_mode = #tpu.pipeline_mode<synchronous>, transform_indices = @transform_5, window_bounds = array<i64: 159, 1>}, {pipeline_mode = #tpu.pipeline_mode<synchronous>, transform_indices = @transform_6, window_bounds = array<i64: 152, 32>}]} {
    %c0 = arith.constant 0 : index
    %c0_0 = arith.constant 0 : index
    %0 = vector.load %arg1[%c0, %c0_0] : memref<159x32xf32, #tpu.memory_space<vmem>>, vector<159x32xf32>
    %c0_1 = arith.constant 0 : index
    %c0_2 = arith.constant 0 : index
    %1 = vector.load %arg2[%c0_1, %c0_2] : memref<32x32xf32, #tpu.memory_space<vmem>>, vector<32x32xf32>
    %cst = arith.constant dense<0.000000e+00> : vector<159x32xf32>
    %2 = tpu.matmul %0, %1, %cst {dimension_numbers = #tpu.dot_dimension_numbers<[1], [0], [0], [1], [0, 0, 1, 1], [], []>} : vector<159x32xf32>, vector<32x32xf32>, vector<159x32xf32> -> vector<159x32xf32>
    %c0_3 = arith.constant 0 : index
    %c0_4 = arith.constant 0 : index
    %3 = vector.load %arg3[%c0_3, %c0_4] : memref<1x32xf32, #tpu.memory_space<vmem>>, vector<1x32xf32>
    %4 = vector.broadcast %3 : vector<1x32xf32> to vector<159x32xf32>
    %5 = arith.addf %2, %4 : vector<159x32xf32>
    %cst_5 = arith.constant 0.000000e+00 : f32
    %6 = vector.broadcast %cst_5 : f32 to vector<159x32xf32>
    %7 = arith.maximumf %5, %6 : vector<159x32xf32>
    %c0_6 = arith.constant 0 : index
    %c0_7 = arith.constant 0 : index
    %8 = vector.load %arg6[%c0_6, %c0_7] : memref<159x1xf32, #tpu.memory_space<vmem>>, vector<159x1xf32>
    %9 = vector.broadcast %8 : vector<159x1xf32> to vector<159x32xf32>
    %10 = arith.mulf %7, %9 : vector<159x32xf32>
    %11 = vector.extract_strided_slice %10 {offsets = [0, 0], sizes = [152, 32], strides = [1, 1]} : vector<159x32xf32> to vector<152x32xf32>
    %c0_8 = arith.constant 0 : index
    %c0_9 = arith.constant 0 : index
    %12 = vector.load %arg8[%c0_8, %c0_9] : memref<152x256xf32, #tpu.memory_space<vmem>>, vector<152x32xf32>
    tpu.vector_store %arg8[%c0_8, %c0_9], %11 {strides = array<i32>} : memref<152x256xf32, #tpu.memory_space<vmem>>, vector<152x32xf32>,
    %13 = vector.extract_strided_slice %10 {offsets = [1, 0], sizes = [152, 32], strides = [1, 1]} : vector<159x32xf32> to vector<152x32xf32>
    %c0_10 = arith.constant 0 : index
    %c32 = arith.constant 32 : index
    %14 = vector.load %arg8[%c0_10, %c32] : memref<152x256xf32, #tpu.memory_space<vmem>>, vector<152x32xf32>
    tpu.vector_store %arg8[%c0_10, %c32], %13 {strides = array<i32>} : memref<152x256xf32, #tpu.memory_space<vmem>>, vector<152x32xf32>,
    %15 = vector.extract_strided_slice %10 {offsets = [2, 0], sizes = [152, 32], strides = [1, 1]} : vector<159x32xf32> to vector<152x32xf32>
    %c0_11 = arith.constant 0 : index
    %c64 = arith.constant 64 : index
    %16 = vector.load %arg8[%c0_11, %c64] : memref<152x256xf32, #tpu.memory_space<vmem>>, vector<152x32xf32>
    tpu.vector_store %arg8[%c0_11, %c64], %15 {strides = array<i32>} : memref<152x256xf32, #tpu.memory_space<vmem>>, vector<152x32xf32>,
    %17 = vector.extract_strided_slice %10 {offsets = [3, 0], sizes = [152, 32], strides = [1, 1]} : vector<159x32xf32> to vector<152x32xf32>
    %c0_12 = arith.constant 0 : index
    %c96 = arith.constant 96 : index
    %18 = vector.load %arg8[%c0_12, %c96] : memref<152x256xf32, #tpu.memory_space<vmem>>, vector<152x32xf32>
    tpu.vector_store %arg8[%c0_12, %c96], %17 {strides = array<i32>} : memref<152x256xf32, #tpu.memory_space<vmem>>, vector<152x32xf32>,
    %19 = vector.extract_strided_slice %10 {offsets = [4, 0], sizes = [152, 32], strides = [1, 1]} : vector<159x32xf32> to vector<152x32xf32>
    %c0_13 = arith.constant 0 : index
    %c128 = arith.constant 128 : index
    %20 = vector.load %arg8[%c0_13, %c128] : memref<152x256xf32, #tpu.memory_space<vmem>>, vector<152x32xf32>
    tpu.vector_store %arg8[%c0_13, %c128], %19 {strides = array<i32>} : memref<152x256xf32, #tpu.memory_space<vmem>>, vector<152x32xf32>,
    %21 = vector.extract_strided_slice %10 {offsets = [5, 0], sizes = [152, 32], strides = [1, 1]} : vector<159x32xf32> to vector<152x32xf32>
    %c0_14 = arith.constant 0 : index
    %c160 = arith.constant 160 : index
    %22 = vector.load %arg8[%c0_14, %c160] : memref<152x256xf32, #tpu.memory_space<vmem>>, vector<152x32xf32>
    tpu.vector_store %arg8[%c0_14, %c160], %21 {strides = array<i32>} : memref<152x256xf32, #tpu.memory_space<vmem>>, vector<152x32xf32>,
    %23 = vector.extract_strided_slice %10 {offsets = [6, 0], sizes = [152, 32], strides = [1, 1]} : vector<159x32xf32> to vector<152x32xf32>
    %c0_15 = arith.constant 0 : index
    %c192 = arith.constant 192 : index
    %24 = vector.load %arg8[%c0_15, %c192] : memref<152x256xf32, #tpu.memory_space<vmem>>, vector<152x32xf32>
    tpu.vector_store %arg8[%c0_15, %c192], %23 {strides = array<i32>} : memref<152x256xf32, #tpu.memory_space<vmem>>, vector<152x32xf32>,
    %25 = vector.extract_strided_slice %10 {offsets = [7, 0], sizes = [152, 32], strides = [1, 1]} : vector<159x32xf32> to vector<152x32xf32>
    %c0_16 = arith.constant 0 : index
    %c224 = arith.constant 224 : index
    %26 = vector.load %arg8[%c0_16, %c224] : memref<152x256xf32, #tpu.memory_space<vmem>>, vector<152x32xf32>
    tpu.vector_store %arg8[%c0_16, %c224], %25 {strides = array<i32>} : memref<152x256xf32, #tpu.memory_space<vmem>>, vector<152x32xf32>,
    %c0_17 = arith.constant 0 : index
    %c0_18 = arith.constant 0 : index
    %27 = vector.load %arg8[%c0_17, %c0_18] : memref<152x256xf32, #tpu.memory_space<vmem>>, vector<152x256xf32>
    %c0_19 = arith.constant 0 : index
    %c0_20 = arith.constant 0 : index
    %28 = vector.load %arg4[%c0_19, %c0_20] : memref<256x32xf32, #tpu.memory_space<vmem>>, vector<256x32xf32>
    %cst_21 = arith.constant dense<0.000000e+00> : vector<152x32xf32>
    %29 = tpu.matmul %27, %28, %cst_21 {dimension_numbers = #tpu.dot_dimension_numbers<[1], [0], [0], [1], [0, 0, 1, 1], [], []>} : vector<152x256xf32>, vector<256x32xf32>, vector<152x32xf32> -> vector<152x32xf32>
    %c0_22 = arith.constant 0 : index
    %c0_23 = arith.constant 0 : index
    %30 = vector.load %arg5[%c0_22, %c0_23] : memref<1x32xf32, #tpu.memory_space<vmem>>, vector<1x32xf32>
    %31 = vector.broadcast %30 : vector<1x32xf32> to vector<152x32xf32>
    %32 = arith.addf %29, %31 : vector<152x32xf32>
    %cst_24 = arith.constant 0.000000e+00 : f32
    %33 = vector.broadcast %cst_24 : f32 to vector<152x32xf32>
    %34 = arith.maximumf %32, %33 : vector<152x32xf32>
    %c0_25 = arith.constant 0 : index
    %c0_26 = arith.constant 0 : index
    %35 = vector.load %arg7[%c0_25, %c0_26] : memref<152x32xf32, #tpu.memory_space<vmem>>, vector<152x32xf32>
    tpu.vector_store %arg7[%c0_25, %c0_26], %34 {strides = array<i32>} : memref<152x32xf32, #tpu.memory_space<vmem>>, vector<152x32xf32>,
    return
  }
  func.func @transform_0(%arg0: i32) -> (i32, i32) {
    %c0_i32 = arith.constant 0 : i32
    %c0_i32_0 = arith.constant 0 : i32
    %c0_i32_1 = arith.constant 0 : i32
    return %c0_i32, %c0_i32_0 : i32, i32
  }
  func.func @transform_1(%arg0: i32) -> (i32, i32) {
    %c0_i32 = arith.constant 0 : i32
    %c0_i32_0 = arith.constant 0 : i32
    %c0_i32_1 = arith.constant 0 : i32
    return %c0_i32, %c0_i32_0 : i32, i32
  }
  func.func @transform_2(%arg0: i32) -> (i32, i32) {
    %c0_i32 = arith.constant 0 : i32
    %c0_i32_0 = arith.constant 0 : i32
    %c0_i32_1 = arith.constant 0 : i32
    return %c0_i32, %c0_i32_0 : i32, i32
  }
  func.func @transform_3(%arg0: i32) -> (i32, i32) {
    %c0_i32 = arith.constant 0 : i32
    %c0_i32_0 = arith.constant 0 : i32
    %c0_i32_1 = arith.constant 0 : i32
    return %c0_i32, %c0_i32_0 : i32, i32
  }
  func.func @transform_4(%arg0: i32) -> (i32, i32) {
    %c0_i32 = arith.constant 0 : i32
    %c0_i32_0 = arith.constant 0 : i32
    %c0_i32_1 = arith.constant 0 : i32
    return %c0_i32, %c0_i32_0 : i32, i32
  }
  func.func @transform_5(%arg0: i32) -> (i32, i32) {
    %c0_i32 = arith.constant 0 : i32
    %c0_i32_0 = arith.constant 0 : i32
    %c0_i32_1 = arith.constant 0 : i32
    return %c0_i32, %c0_i32_0 : i32, i32
  }
  func.func @transform_6(%arg0: i32) -> (i32, i32) {
    %c0_i32 = arith.constant 0 : i32
    %c0_i32_0 = arith.constant 0 : i32
    %c0_i32_1 = arith.constant 0 : i32
    return %c0_i32, %c0_i32_0 : i32, i32
  }
}

</mosaic_0001>

<bundles_post_ra>
// kernel: tpu_custom_call.1
= control target key start
LH: loop header
LB: loop body
LE: loop exit
PB: predicated region body
PF: predicated region fallthrough
CT: control target
= control target key end

     0   :  { %vm54_vm0 = vcmask 261120   ;;  %v1714_v3 = vmov 0   ;;  %v3190_v47 = vmov 0.0|0.0   ;;  %vm908_vm1 = vcmask 1042432   ;;  %s1716_s25 = smov 32   ;;  %s1717_s26 = smov 64   ;;  %s3178_s1 = inlined_call_operand.vmem [shape: f32[32,32], index: 1, kind: input, shape index: {}]   ;;  %s3179_s0 = inlined_call_operand.vmem [shape: f32[159,32], index: 0, kind: input, shape index: {}]   ;;  %s3180_s5 = inlined_call_operand.vmem [shape: f32[159,1], index: 5, kind: input, shape index: {}]   ;;  %s3181_s3 = inlined_call_operand.vmem [shape: f32[256,32], index: 3, kind: input, shape index: {}]   ;;  %s3182_s2 = inlined_call_operand.vmem [shape: f32[1,32], index: 2, kind: input, shape index: {}]   ;;  %s3183_s4 = inlined_call_operand.vmem [shape: f32[1,32], index: 4, kind: input, shape index: {}]   ;;  %s3184_s6 = inlined_call_operand.vmem [shape: f32[152,32], index: 6, kind: output, shape index: {}]  }
   0x1   :  { %v43_v0 = vld [vmem:[%s3178_s1] sm:$0xff]  ;;  %v44_v1 = vld [vmem:[%s3178_s1 + $0x8] sm:$0xff]  ;;  %v45_v2 = vld [vmem:[%s3178_s1 + $0x10] sm:$0xff]  ;;  %1713 = vset.pattern.permute.xlu1 %v1714_v3  ;;  %1712 = vset.pattern.permute.xlu0 %v1714_v3  ;;  %vm479_vm2 = vcmask 1046528   ;;  %vm1024_vm3 = vcmask 1041408   ;;  %vm596_vm4 = vcmask 1045504  }
   0x2   :  { %v1619_v4 = vpack.c.bf16 %v44_v1, %v43_v0  ;;  %v46_v5 = vld [vmem:[%s3178_s1 + $0x18] sm:$0xff]  ;;  %v23_v6 = vld [vmem:[%s3179_s0] sm:$0xff]  ;;  %v24_v8 = vld [vmem:[%s3179_s0 + $0x8] sm:$0xff]  ;;  %1675 = vmatprep.subr.bf16.mxu1 %v3190_v47  ;;  %vm1140_vm5 = vcmask 1040384   ;;  %vm713_vm6 = vcmask 1044480   ;;  %s1718_s27 = smov 96  }
   0x3   :  { %v1623_v7 = vpack.c.bf16 %v46_v5, %v45_v2  ;;  %1589 = vmatprep.mubr.msk.f32.mxu0 %vm54_vm0, %v23_v6  ;;  %v310_v9 = vld [vmem:[%s3180_s5 + $0x50] sm:$0xff]  ;;  %v308_v10 = vld [vmem:[%s3180_s5 + $0x40] sm:$0xff]  ;;  %v311_v12 = vld [vmem:[%s3180_s5 + $0x58] sm:$0xff]  ;;  %vm830_vm7 = vcmask 1043456   ;;  %vm576_vm8 = vcmask 523520   ;;  %vm693_vm9 = vcmask 785920  }
   0x4   :  { %1620 = vmatprep.subr.bf16.mxu0 %v1619_v4  ;;  %v25_v11 = vld [vmem:[%s3179_s0 + $0x10] sm:$0xff]  ;;  %372 = vperm.xlu1 %1713, %v310_v9   ;;  %v309_v13 = vld [vmem:[%s3180_s5 + $0x48] sm:$0xff]  ;;  %v26_v14 = vld [vmem:[%s3179_s0 + $0x18] sm:$0xff]  ;;  %vm810_vm10 = vcmask 1048320  }
   0x5   :  { %1622 = vmatpush3.bf16.msra.mxu0 %v1619_v4  ;;  %362 = vperm.xlu0 %1712, %v308_v10   ;;  %v27_v15 = vld [vmem:[%s3179_s0 + $0x20] sm:$0xff]  ;;  %v301_v16 = vld [vmem:[%s3180_s5 + $0x8] sm:$0xff]  ;;  %v29_v19 = vld [vmem:[%s3179_s0 + $0x30] sm:$0xff] }
   0x6   :  { %1624 = vmatprep.subr.bf16.mxu0 %v1623_v7  ;;  %v300_v17 = vld [vmem:[%s3180_s5] sm:$0xff]  ;;  %v28_v18 = vld [vmem:[%s3179_s0 + $0x28] sm:$0xff]  ;;  %v302_v20 = vld [vmem:[%s3180_s5 + $0x10] sm:$0xff] }
   0x7   :  { %v312_v21 = vld [vmem:[%s3180_s5 + $0x60] sm:$0xff]  ;;  %v30_v22 = vld [vmem:[%s3179_s0 + $0x38] sm:$0xff]  ;;  %v313_v25 = vld [vmem:[%s3180_s5 + $0x68] sm:$0xff] }
   0x8   :  { %377 = vperm.xlu1 %1713, %v311_v12   ;;  %v31_v23 = vld [vmem:[%s3179_s0 + $0x40] sm:$0xff]  ;;  %v303_v24 = vld [vmem:[%s3180_s5 + $0x18] sm:$0xff]  ;;  %v32_v26 = vld [vmem:[%s3179_s0 + $0x48] sm:$0xff] }
   0x9   :  { %1626 = vmatpush3.bf16.msra.mxu0 %v1623_v7  ;;  %367 = vperm.xlu0 %1712, %v309_v13   ;;  %v33_v27 = vld [vmem:[%s3179_s0 + $0x50] sm:$0xff]  ;;  %v304_v28 = vld [vmem:[%s3180_s5 + $0x20] sm:$0xff]  ;;  %v34_v30 = vld [vmem:[%s3179_s0 + $0x58] sm:$0xff] }
   0xa   :  { %v314_v29 = vld [vmem:[%s3180_s5 + $0x70] sm:$0xff]  ;;  %v35_v31 = vld [vmem:[%s3179_s0 + $0x60] sm:$0xff]  ;;  %v305_v32 = vld [vmem:[%s3180_s5 + $0x28] sm:$0xff]  ;;  %1627 = vmatprep.subr.bf16.mxu0 %v3190_v47 }
   0xb   :  { %v315_v33 = vld [vmem:[%s3180_s5 + $0x78] sm:$0xff]  ;;  %v36_v34 = vld [vmem:[%s3179_s0 + $0x68] sm:$0xff]  ;;  %v37_v35 = vld [vmem:[%s3179_s0 + $0x70] sm:$0xff] }
   0xc   :  { %1590 = vmatmul.mubr.msk.f32.vlgmr.msra.gmra.mrb[0].mxu0 %vm54_vm0, %v24_v8  ;;  %327 = vperm.xlu1 %1713, %v301_v16   ;;  %v306_v36 = vld [vmem:[%s3180_s5 + $0x30] sm:$0xff]  ;;  %v316_v37 = vld [vmem:[%s3180_s5 + $0x80] sm:$0xff]  ;;  %v38_v38 = vld [vmem:[%s3179_s0 + $0x78] sm:$0xff] }
   0xd   :  { %1592 = vmatprep.mubr.msk.f32.mxu0 %vm54_vm0, %v25_v11  ;;  %322 = vperm.xlu0 %1712, %v300_v17   ;;  %v39_v39 = vld [vmem:[%s3179_s0 + $0x80] sm:$0xff]  ;;  %v307_v40 = vld [vmem:[%s3180_s5 + $0x38] sm:$0xff]  ;;  %v317_v41 = vld [vmem:[%s3180_s5 + $0x88] sm:$0xff] }
   0xe   :  { %v40_v42 = vld [vmem:[%s3179_s0 + $0x88] sm:$0xff]  ;;  %v41_v43 = vld [vmem:[%s3179_s0 + $0x90] sm:$0xff]  ;;  %v319_v44 = vld [vmem:[%s3180_s5 + $0x98] sm:$0x7f] }
   0xf   :  { %v318_v45 = vld [vmem:[%s3180_s5 + $0x90] sm:$0xff]  ;;  %v42_v46 = vld [vmem:[%s3179_s0 + $0x98] sm:$0x7f]  ;;  %v1294_v48 = vld [vmem:[%s3181_s3] sm:$0xff] }
  0x10   :  { %1593 = vmatmul.mubr.msk.f32.gmra.mrb[2].mxu0 %vm54_vm0, %v26_v14  ;;  %332 = vperm.xlu1 %1713, %v302_v20   ;;  %v1295_v49 = vld [vmem:[%s3181_s3 + $0x8] sm:$0xff]  ;;  %v1296_v51 = vld [vmem:[%s3181_s3 + $0x10] sm:$0xff]  ;;  %v1297_v52 = vld [vmem:[%s3181_s3 + $0x18] sm:$0xff] }
  0x11   :  { %1595 = vmatprep.mubr.msk.f32.mxu0 %vm54_vm0, %v27_v15  ;;  %382 = vperm.xlu0 %1712, %v312_v21   ;;  %v1628_v50 = vpack.c.bf16 %v1295_v49, %v1294_v48  ;;  %v1631_v53 = vpack.c.bf16 %v1297_v52, %v1296_v51  ;;  %v1298_v54 = vld [vmem:[%s3181_s3 + $0x20] sm:$0xff]  ;;  %v1299_v55 = vld [vmem:[%s3181_s3 + $0x28] sm:$0xff]  ;;  %v1300_v58 = vld [vmem:[%s3181_s3 + $0x30] sm:$0xff] }
  0x12   :  { %v1634_v57 = vpack.c.bf16 %v1299_v55, %v1298_v54  ;;  %v1301_v59 = vld [vmem:[%s3181_s3 + $0x38] sm:$0xff]  ;;  %v1302_v62 = vld [vmem:[%s3181_s3 + $0x40] sm:$0xff]  ;;  %v1303_v63 = vld [vmem:[%s3181_s3 + $0x48] sm:$0xff] }
  0x13   :  { %1629 = vmatpush1.bf16.msra.mxu0 %v1628_v50  ;;  %1691 = vmatpush1.bf16.msra.mxu1 %v1628_v50  ;;  %v1637_v60 = vpack.c.bf16 %v1301_v59, %v1300_v58  ;;  %v1640_v0 = vpack.c.bf16 %v1303_v63, %v1302_v62  ;;  %v1304_v1 = vld [vmem:[%s3181_s3 + $0x50] sm:$0xff]  ;;  %v1305_v2 = vld [vmem:[%s3181_s3 + $0x58] sm:$0xff]  ;;  %v1306_v5 = vld [vmem:[%s3181_s3 + $0x60] sm:$0xff] }
  0x14   :  { %1596 = vmatmul.mubr.msk.f32.gmra.mrb[4].mxu0 %vm54_vm0, %v28_v18  ;;  %337 = vperm.xlu1 %1713, %v303_v24   ;;  %v1643_v4 = vpack.c.bf16 %v1305_v2, %v1304_v1  ;;  %v1307_v6 = vld [vmem:[%s3181_s3 + $0x68] sm:$0xff]  ;;  %v1308_v10 = vld [vmem:[%s3181_s3 + $0x70] sm:$0xff]  ;;  %v1309_v11 = vld [vmem:[%s3181_s3 + $0x78] sm:$0xff] }
  0x15   :  { %1598 = vmatprep.mubr.msk.f32.mxu0 %vm54_vm0, %v29_v19  ;;  %387 = vperm.xlu0 %1712, %v313_v25   ;;  %v1646_v7 = vpack.c.bf16 %v1307_v6, %v1306_v5  ;;  %v1649_v12 = vpack.c.bf16 %v1309_v11, %v1308_v10  ;;  %v1310_v13 = vld [vmem:[%s3181_s3 + $0x80] sm:$0xff]  ;;  %v1311_v14 = vld [vmem:[%s3181_s3 + $0x88] sm:$0xff]  ;;  %v1312_v20 = vld [vmem:[%s3181_s3 + $0x90] sm:$0xff] }
  0x16   :  { %1630 = vmatprep.subr.bf16.mxu0 %v3190_v47  ;;  %1676 = vmatprep.subr.bf16.mxu1 %v3190_v47  ;;  %v1652_v16 = vpack.c.bf16 %v1311_v14, %v1310_v13  ;;  %v1995_v19 = vld [vmem:[%s3182_s2] ss:$0 sm:$0xff]  ;;  %v1313_v21 = vld [vmem:[%s3181_s3 + $0x98] sm:$0xff] }
  0x17   :  { %1632 = vmatpush1.bf16.msra.mxu0 %v1631_v53  ;;  %1692 = vmatpush1.bf16.msra.mxu1 %v1631_v53 }
  0x18   :  { %1599 = vmatmul.mubr.msk.f32.gmra.mrb[6].mxu0 %vm54_vm0, %v30_v22  ;;  %342 = vperm.xlu1 %1713, %v304_v28   ;;  %v1314_v28 = vld [vmem:[%s3181_s3 + $0xa0] sm:$0xff] }
  0x19   :  { %1601 = vmatprep.mubr.msk.f32.mxu0 %vm54_vm0, %v31_v23  ;;  %392 = vperm.xlu0 %1712, %v314_v29   ;;  %v1655_v23 = vpack.c.bf16 %v1313_v21, %v1312_v20  ;;  %v1315_v29 = vld [vmem:[%s3181_s3 + $0xa8] sm:$0xff] }
  0x1a   :  { %1633 = vmatprep.subr.bf16.mxu0 %v3190_v47  ;;  %1677 = vmatprep.subr.bf16.mxu1 %v3190_v47 }
  0x1b   :  { %1635 = vmatpush1.bf16.msra.mxu0 %v1634_v57  ;;  %1693 = vmatpush1.bf16.msra.mxu1 %v1634_v57 }
  0x1c   :  { %1602 = vmatmul.mubr.msk.f32.gmra.mrb[8].mxu0 %vm54_vm0, %v32_v26  ;;  %347 = vperm.xlu1 %1713, %v305_v32  }
  0x1d   :  { %1604 = vmatprep.mubr.msk.f32.mxu0 %vm54_vm0, %v33_v27  ;;  %397 = vperm.xlu0 %1712, %v315_v33  }
  0x1e   :  { %1636 = vmatprep.subr.bf16.mxu0 %v3190_v47  ;;  %1678 = vmatprep.subr.bf16.mxu1 %v3190_v47 }
  0x1f   :  { %1638 = vmatpush1.bf16.msra.mxu0 %v1637_v60  ;;  %1694 = vmatpush1.bf16.msra.mxu1 %v1637_v60 }
  0x20   :  { %1605 = vmatmul.mubr.msk.f32.gmra.mrb[10].mxu0 %vm54_vm0, %v34_v30  ;;  %352 = vperm.xlu1 %1713, %v306_v36  }
  0x21   :  { %1607 = vmatprep.mubr.msk.f32.mxu0 %vm54_vm0, %v35_v31  ;;  %402 = vperm.xlu0 %1712, %v316_v37   ;;  %v1658_v31 = vpack.c.bf16 %v1315_v29, %v1314_v28 }
  0x22   :  { %1639 = vmatprep.subr.bf16.mxu0 %v3190_v47  ;;  %1679 = vmatprep.subr.bf16.mxu1 %v3190_v47 }
  0x23   :  { %1641 = vmatpush1.bf16.msra.mxu0 %v1640_v0  ;;  %1695 = vmatpush1.bf16.msra.mxu1 %v1640_v0 }
  0x24   :  { %1608 = vmatmul.mubr.msk.f32.gmra.mrb[12].mxu0 %vm54_vm0, %v36_v34  ;;  %357 = vperm.xlu1 %1713, %v307_v40  }
  0x25   :  { %1610 = vmatprep.mubr.msk.f32.mxu0 %vm54_vm0, %v37_v35  ;;  %407 = vperm.xlu0 %1712, %v317_v41  }
  0x26   :  { %1642 = vmatprep.subr.bf16.mxu0 %v3190_v47  ;;  %1680 = vmatprep.subr.bf16.mxu1 %v3190_v47 }
  0x27   :  { %1644 = vmatpush1.bf16.msra.mxu0 %v1643_v4  ;;  %1696 = vmatpush1.bf16.msra.mxu1 %v1643_v4 }
  0x28   :  { %1611 = vmatmul.mubr.msk.f32.gmra.mrb[14].mxu0 %vm54_vm0, %v38_v38  ;;  %417 = vperm.xlu1 %1713, %v319_v44  }
  0x29   :  { %1613 = vmatprep.mubr.msk.f32.mxu0 %vm54_vm0, %v39_v39  ;;  %412 = vperm.xlu0 %1712, %v318_v45  }
  0x2a   :  { %1645 = vmatprep.subr.bf16.mxu0 %v3190_v47  ;;  %1681 = vmatprep.subr.bf16.mxu1 %v3190_v47 }
  0x2b   :  { %1647 = vmatpush1.bf16.msra.mxu0 %v1646_v7  ;;  %1697 = vmatpush1.bf16.msra.mxu1 %v1646_v7 }
  0x2c   :  { %1614 = vmatmul.mubr.msk.f32.gmra.mrb[16].mxu0 %vm54_vm0, %v40_v42  ;;  %1648 = vmatprep.subr.bf16.mxu0 %v3190_v47 }
  0x2d   :  { %1616 = vmatprep.mubr.msk.f32.mxu0 %vm54_vm0, %v41_v43  ;;  %1682 = vmatprep.subr.bf16.mxu1 %v3190_v47 }
  0x2f   :  { %1650 = vmatpush1.bf16.msra.mxu0 %v1649_v12  ;;  %1698 = vmatpush1.bf16.msra.mxu1 %v1649_v12 }
  0x30   :  { %1617 = vmatmul.mubr.msk.f32.gmra.mrb[18].mxu0 %vm54_vm0, %v42_v46  ;;  %1651 = vmatprep.subr.bf16.mxu0 %v3190_v47 }
  0x31   :  { %1683 = vmatprep.subr.bf16.mxu1 %v3190_v47 }
  0x33   :  { %1653 = vmatpush1.bf16.msra.mxu0 %v1652_v16  ;;  %1699 = vmatpush1.bf16.msra.mxu1 %v1652_v16 }
  0x34   :  { %1654 = vmatprep.subr.bf16.mxu0 %v3190_v47  ;;  %1684 = vmatprep.subr.bf16.mxu1 %v3190_v47 }
  0x37   :  { %1656 = vmatpush1.bf16.msra.mxu0 %v1655_v23  ;;  %1700 = vmatpush1.bf16.msra.mxu1 %v1655_v23 }
  0x38   :  { %1657 = vmatprep.subr.bf16.mxu0 %v3190_v47  ;;  %1685 = vmatprep.subr.bf16.mxu1 %v3190_v47 }
  0x3b   :  { %1659 = vmatpush1.bf16.msra.mxu0 %v1658_v31  ;;  %1701 = vmatpush1.bf16.msra.mxu1 %v1658_v31 }
  0x3c   :  { %1660 = vmatprep.subr.bf16.mxu0 %v3190_v47  ;;  %1686 = vmatprep.subr.bf16.mxu1 %v3190_v47 }
  0x83   :  { %v1928_v56 = vpop.permute.xlu1 %372 }
  0x84   :  { %v1968_v9 = vpop.permute.xlu0 %362 }
  0x87   :  { %v1940_v61 = vpop.permute.xlu1 %377 }
  0x88   :  { %v1986_v17 = vpop.permute.xlu0 %367 }
  0x8b   :  { %v328_v3 = vpop.permute.xlu1 %327 }
  0x8c   :  { %v323_v22 = vpop.permute.xlu0 %322 }
  0x8f   :  { %v1966_v8 = vpop.permute.xlu1 %332 }
  0x90   :  { %v2013_v35 = vpop.permute.xlu0 %382 }
  0x93   :  { %v338_v15 = vpop.permute.xlu1 %337 }
  0x94   :  { %v2044_v63 = vpop.permute.xlu0 %387 }
  0x97   :  { %v1990_v18 = vpop.permute.xlu1 %342 }
  0x98   :  { %v2089_v31 = vpop.permute.xlu0 %392 }
  0x9b   :  { %v348_v32 = vpop.permute.xlu1 %347 }
  0x9f   :  { %v353_v57 = vpop.permute.xlu1 %352 }
  0xdf   :  { %v1591_v24 = vpop.f32.mrb[0].mxu0 }
  0xe0   :  { %v187_v25 = vadd.f32 %v1591_v24, %v1995_v19  ;;  %v181_v26 = vpop.f32.mrb[1].mxu0 }
  0xe1   :  { %v182_v27 = vadd.f32 %v1995_v19, %v181_v26 }
  0xe2   :  { %v281_v30 = vmax.f32 %v187_v25, 0.0  ;;  %v358_v25 = vpop.permute.xlu1 %357 }
  0xe3   :  { %v280_v33 = vmax.f32 %v182_v27, 0.0  ;;  %v1594_v34 = vpop.f32.mrb[2].mxu0 }
  0xe4   :  { %v2015_v36 = vmul.f32 %v328_v3, %v281_v30  ;;  %v197_v37 = vadd.f32 %v1594_v34, %v1995_v19  ;;  %v191_v38 = vpop.f32.mrb[3].mxu0 }
  0xe5   :  { %v2018_v39 = vmul.f32 %v323_v22, %v280_v33  ;;  %v192_v40 = vadd.f32 %v1995_v19, %v191_v38 }
  0xe6   :  { %441 = vst.msk [vmem:[#allocation2 + $0x10] sm:$0xff] %vm54_vm0, %v2015_v36  ;;  %v283_v41 = vmax.f32 %v197_v37, 0.0  ;;  %v910_v42 = vrot.slane %v2015_v36, 5  ;;  %v481_v43 = vrot.slane %v2015_v36, 1  ;;  %v1026_v44 = vrot.slane %v2015_v36, 6 }
  0xe7   :  { %440 = vst.msk [vmem:[#allocation2] sm:$0xff] %vm54_vm0, %v2018_v39  ;;  %v282_v45 = vmax.f32 %v192_v40, 0.0  ;;  %v1597_v46 = vpop.f32.mrb[4].mxu0  ;;  %v909_v48 = vrot.slane %v2018_v39, 5  ;;  %v480_v49 = vrot.slane %v2018_v39, 1  ;;  %v1025_v50 = vrot.slane %v2018_v39, 6 }
  0xe8   :  { %v2033_v51 = vmul.f32 %v338_v15, %v283_v41  ;;  %v207_v52 = vadd.f32 %v1597_v46, %v1995_v19  ;;  %v201_v53 = vpop.f32.mrb[5].mxu0  ;;  %v597_v54 = vrot.slane %v2018_v39, 2  ;;  %v598_v55 = vrot.slane %v2015_v36, 2 }
  0xe9   :  { %v2039_v58 = vmul.f32 %v1966_v8, %v282_v45  ;;  %v202_v59 = vadd.f32 %v1995_v19, %v201_v53  ;;  %v911_v60 = vsel %vm908_vm1, %v909_v48, %v910_v42  ;;  %v482_v62 = vsel %vm479_vm2, %v480_v49, %v481_v43 }
  0xea   :  { %443 = vst.msk [vmem:[#allocation2 + $0x30] sm:$0xff] %vm54_vm0, %v2033_v51  ;;  %v285_v0 = vmax.f32 %v207_v52, 0.0  ;;  %948 = vrot.lane.b32.xlu0 %v911_v60, %s1716_s25  ;;  %v1027_v1 = vsel %vm1024_vm3, %v1025_v50, %v1026_v44  ;;  %v2051_v2 = vsel %vm596_vm4, %v597_v54, %v598_v55  ;;  %v1141_v3 = vrot.slane %v2018_v39, 7 }
  0xeb   :  { %442 = vst.msk [vmem:[#allocation2 + $0x20] sm:$0xff] %vm54_vm0, %v2039_v58  ;;  %v284_v4 = vmax.f32 %v202_v59, 0.0  ;;  %v1600_v5 = vpop.f32.mrb[6].mxu0  ;;  %v1142_v6 = vrot.slane %v2015_v36, 7  ;;  %v714_v7 = vrot.slane %v2018_v39, 3  ;;  %v715_v8 = vrot.slane %v2015_v36, 3 }
  0xec   :  { %v2059_v10 = vmul.f32 %v348_v32, %v285_v0  ;;  %v217_v11 = vadd.f32 %v1600_v5, %v1995_v19  ;;  %v211_v12 = vpop.f32.mrb[7].mxu0  ;;  %v912_v13 = vrot.slane %v2039_v58, 5  ;;  %v483_v14 = vrot.slane %v2039_v58, 1 }
  0xed   :  { %v2065_v15 = vmul.f32 %v1990_v18, %v284_v4  ;;  %v212_v16 = vadd.f32 %v1995_v19, %v211_v12  ;;  %v2069_v20 = vsel %vm1140_vm5, %v1141_v3, %v1142_v6  ;;  %v2072_v21 = vsel %vm713_vm6, %v714_v7, %v715_v8  ;;  %v398_v4 = vpop.permute.xlu0 %397 }
  0xee   :  { %445 = vst.msk [vmem:[#allocation2 + $0x50] sm:$0xff] %vm54_vm0, %v2059_v10  ;;  %v287_v22 = vmax.f32 %v217_v11, 0.0  ;;  %519 = vrot.lane.b32.xlu0 %v482_v62, %s1716_s25  ;;  %v2078_v23 = vsel %vm908_vm1, %v910_v42, %v912_v13  ;;  %v2081_v18 = vsel %vm479_vm2, %v481_v43, %v483_v14  ;;  %v1028_v24 = vrot.slane %v2039_v58, 6 }
  0xef   :  { %444 = vst.msk [vmem:[#allocation2 + $0x40] sm:$0xff] %vm54_vm0, %v2065_v15  ;;  %v286_v26 = vmax.f32 %v212_v16, 0.0  ;;  %v1603_v27 = vpop.f32.mrb[8].mxu0  ;;  %v600_v28 = vrot.slane %v2039_v58, 2  ;;  %v1144_v29 = vrot.slane %v2039_v58, 7  ;;  %v717_v30 = vrot.slane %v2039_v58, 3 }
  0xf0   :  { %v2091_v32 = vmul.f32 %v358_v25, %v287_v22  ;;  %v227_v33 = vadd.f32 %v1603_v27, %v1995_v19  ;;  %v221_v34 = vpop.f32.mrb[9].mxu0  ;;  %v2095_v37 = vsel %vm1024_vm3, %v1026_v44, %v1028_v24  ;;  %v914_v38 = vrot.slane %v2033_v51, 5 }
  0xf1   :  { %v2098_v40 = vmul.f32 %v353_v57, %v286_v26  ;;  %v222_v41 = vadd.f32 %v1995_v19, %v221_v34  ;;  %v2102_v42 = vsel %vm596_vm4, %v598_v55, %v600_v28  ;;  %v2105_v43 = vsel %vm1140_vm5, %v1142_v6, %v1144_v29 }
  0xf2   :  { %3207 = vst [vmem:[#allocation3_spill] sm:$0xff] %v2091_v32  ;;  %447 = vst.msk [vmem:[#allocation2 + $0x70] sm:$0xff] %vm54_vm0, %v2091_v32  ;;  %v289_v45 = vmax.f32 %v227_v33, 0.0  ;;  %1064 = vrot.lane.b32.xlu0 %v1027_v1, %s1717_s26  ;;  %v2111_v44 = vsel %vm713_vm6, %v715_v8, %v717_v30  ;;  %v2116_v46 = vsel %vm908_vm1, %v912_v13, %v914_v38  ;;  %v485_v48 = vrot.slane %v2033_v51, 1 }
  0xf3   :  { %446 = vst.msk [vmem:[#allocation2 + $0x60] sm:$0xff] %vm54_vm0, %v2098_v40  ;;  %v288_v49 = vmax.f32 %v222_v41, 0.0  ;;  %v1606_v50 = vpop.f32.mrb[10].mxu0  ;;  %v1030_v52 = vrot.slane %v2033_v51, 6  ;;  %v3195_v53 = vrot.slane %v2033_v51, 2  ;;  %v3193_v54 = vrot.slane %v2033_v51, 7 }
  0xf4   :  { %v2125_v55 = vmul.f32 %v1986_v17, %v289_v45  ;;  %v237_v57 = vadd.f32 %v1606_v50, %v1995_v19  ;;  %v231_v59 = vpop.f32.mrb[11].mxu0  ;;  %v2131_v60 = vsel %vm479_vm2, %v483_v14, %v485_v48  ;;  %v3192_v62 = vrot.slane %v2033_v51, 3 }
  0xf5   :  { %v2135_v0 = vmul.f32 %v1968_v9, %v288_v49  ;;  %v232_v1 = vadd.f32 %v1995_v19, %v231_v59  ;;  %v2141_v17 = vsel %vm1024_vm3, %v1028_v24, %v1030_v52  ;;  %v2146_v3 = vsel %vm596_vm4, %v600_v28, %v3195_v53 }
  0xf6   :  { %449 = vst.msk [vmem:[#allocation2 + $0x90] sm:$0xff] %vm54_vm0, %v2125_v55  ;;  %v291_v5 = vmax.f32 %v237_v57, 0.0  ;;  %636 = vrot.lane.b32.xlu0 %v2051_v2, %s1717_s26  ;;  %v497_v9 = vrot.slane %v2125_v55, 1  ;;  %v614_v6 = vrot.slane %v2125_v55, 2  ;;  %v731_v7 = vrot.slane %v2125_v55, 3 }
  0xf7   :  { %448 = vst.msk [vmem:[#allocation2 + $0x80] sm:$0xff] %vm54_vm0, %v2135_v0  ;;  %v290_v8 = vmax.f32 %v232_v1, 0.0  ;;  %v1609_v11 = vpop.f32.mrb[12].mxu0  ;;  %v3187_v12 = vrot.slane %v2135_v0, 1  ;;  %v3186_v13 = vrot.slane %v2135_v0, 2  ;;  %v3185_v14 = vrot.slane %v2135_v0, 3 }
  0xf8   :  { %v2161_v16 = vmul.f32 %v1940_v61, %v291_v5  ;;  %v247_v2 = vadd.f32 %v1609_v11, %v1995_v19  ;;  %v241_v22 = vpop.f32.mrb[13].mxu0  ;;  %v2167_v24 = vsel %vm1140_vm5, %v1144_v29, %v3193_v54  ;;  %v2172_v25 = vsel %vm713_vm6, %v717_v30, %v3192_v62 }
  0xf9   :  { %v2175_v26 = vmul.f32 %v1928_v56, %v290_v8  ;;  %v242_v27 = vadd.f32 %v1995_v19, %v241_v22  ;;  %v498_v61 = vsel %vm479_vm2, %v3187_v12, %v497_v9  ;;  %v615_v28 = vsel %vm596_vm4, %v3186_v13, %v614_v6 }
  0xfa   :  { %451 = vst.msk [vmem:[#allocation2 + $0xb0] sm:$0xff] %vm54_vm0, %v2161_v16  ;;  %v293_v29 = vmax.f32 %v247_v2, 0.0  ;;  %535 = vrot.lane.b32.xlu1 %v498_v61, %s1716_s25  ;;  %1180 = vrot.lane.b32.xlu0 %v2069_v20, %s1718_s27  ;;  %v732_v56 = vsel %vm713_vm6, %v3185_v14, %v731_v7  ;;  %v501_v30 = vrot.slane %v2161_v16, 1  ;;  %v618_v33 = vrot.slane %v2161_v16, 2  ;;  %v403_v20 = vpop.permute.xlu0 %402 }
  0xfb   :  { %450 = vst.msk [vmem:[#allocation2 + $0xa0] sm:$0xff] %vm54_vm0, %v2175_v26  ;;  %v292_v34 = vmax.f32 %v242_v27, 0.0  ;;  %v1612_v41 = vpop.f32.mrb[14].mxu0  ;;  %v499_v45 = vrot.slane %v2175_v26, 1  ;;  %v616_v49 = vrot.slane %v2175_v26, 2  ;;  %v733_v50 = vrot.slane %v2175_v26, 3 }
  0xfc   :  { %v2200_v57 = vmul.f32 %v2044_v63, %v293_v29  ;;  %v257_v59 = vadd.f32 %v1612_v41, %v1995_v19  ;;  %v251_v1 = vpop.f32.mrb[15].mxu0  ;;  %v735_v5 = vrot.slane %v2161_v16, 3  ;;  %v3189_v8 = vrot.slane %v2161_v16, 5 }
  0xfd   :  { %v2206_v11 = vmul.f32 %v2013_v35, %v292_v34  ;;  %v252_v2 = vadd.f32 %v1995_v19, %v251_v1  ;;  %v500_v22 = vsel %vm479_vm2, %v497_v9, %v499_v45  ;;  %v2211_v27 = vsel %vm596_vm4, %v614_v6, %v616_v49 }
  0xfe   :  { %453 = vst.msk [vmem:[#allocation2 + $0xd0] sm:$0xff] %vm54_vm0, %v2200_v57  ;;  %v295_v63 = vmax.f32 %v257_v59, 0.0  ;;  %652 = vrot.lane.b32.xlu1 %v615_v28, %s1717_s26  ;;  %753 = vrot.lane.b32.xlu0 %v2072_v21, %s1718_s27  ;;  %v2219_v61 = vsel %vm713_vm6, %v731_v7, %v733_v50  ;;  %v2222_v35 = vsel %vm479_vm2, %v499_v45, %v501_v30  ;;  %v934_v47 = vrot.slane %v2200_v57, 5 }
  0xff   :  { %v2225_v9 = vsel %vm596_vm4, %v616_v49, %v618_v33  ;;  %452 = vst.msk [vmem:[#allocation2 + $0xc0] sm:$0xff] %vm54_vm0, %v2206_v11  ;;  %v294_v6 = vmax.f32 %v252_v2, 0.0  ;;  %v1615_v29 = vpop.f32.mrb[16].mxu0  ;;  %v2230_v34 = vsel %vm713_vm6, %v733_v50, %v735_v5  ;;  %v932_v28 = vrot.slane %v2206_v11, 5 }
 0x100   :  { %v503_v21 = vrot.slane %v2206_v11, 1  ;;  %v2234_v7 = vmul.f32 %v398_v4, %v295_v63  ;;  %v267_v41 = vadd.f32 %v1615_v29, %v1995_v19  ;;  %v261_v45 = vpop.f32.mrb[17].mxu0  ;;  %v3188_v49 = vrot.slane %v2161_v16, 6  ;;  %v408_v63 = vpop.permute.xlu0 %407 }
 0x101   :  { %v1048_v59 = vrot.slane %v2206_v11, 6  ;;  %v2240_v1 = vmul.f32 %v2089_v31, %v294_v6  ;;  %v262_v2 = vadd.f32 %v1995_v19, %v261_v45  ;;  %v2246_v50 = vsel %vm908_vm1, %v3189_v8, %v932_v28 }
 0x102   :  { %v2249_v4 = vsel %vm479_vm2, %v501_v30, %v503_v21  ;;  %455 = vst.msk [vmem:[#allocation2 + $0xf0] sm:$0xff] %vm54_vm0, %v2234_v7  ;;  %v297_v29 = vmax.f32 %v267_v41, 0.0  ;;  %769 = vrot.lane.b32.xlu1 %v732_v56, %s1718_s27  ;;  %950 = vrot.lane.b32.xlu0 %v2078_v23, %s1716_s25  ;;  %v620_v6 = vrot.slane %v2206_v11, 2  ;;  %v3194_v30 = vrot.slane %v2161_v16, 7 }
 0x103   :  { %v2259_v31 = vsel %vm1024_vm3, %v3188_v49, %v1048_v59  ;;  %454 = vst.msk [vmem:[#allocation2 + $0xe0] sm:$0xff] %vm54_vm0, %v2240_v1  ;;  %v296_v45 = vmax.f32 %v262_v2, 0.0  ;;  %v1618_v14 = vpop.f32.mrb[18].mxu0  ;;  %v1164_v41 = vrot.slane %v2206_v11, 7  ;;  %v737_v56 = vrot.slane %v2206_v11, 3 }
 0x104   :  { %v916_v23 = vrot.slane %v2065_v15, 5  ;;  %v2268_v13 = vmul.f32 %v408_v63, %v297_v29  ;;  %v2271_v12 = vadd.f32 %v1618_v14, %v1995_v19  ;;  %v271_v49 = vpop.f32.mrb[19].mxu0  ;;  %v2274_v8 = vsel %vm596_vm4, %v618_v33, %v620_v6 }
 0x105   :  { %v2277_v62 = vmul.f32 %v403_v20, %v296_v45  ;;  %v272_v2 = vadd.f32 %v1995_v19, %v271_v49  ;;  %v2283_v54 = vsel %vm1140_vm5, %v3194_v30, %v1164_v41  ;;  %v2286_v63 = vsel %vm713_vm6, %v735_v5, %v737_v56  ;;  %v413_v49 = vpop.permute.xlu0 %412 }
 0x106   :  { %457 = vst.msk [vmem:[#allocation2 + $0x110] sm:$0xff] %vm54_vm0, %v2268_v13  ;;  %537 = vrot.lane.b32.xlu1 %v500_v22, %s1716_s25  ;;  %521 = vrot.lane.b32.xlu0 %v2081_v18, %s1716_s25  ;;  %v2296_v19 = vsel %vm908_vm1, %v914_v38, %v916_v23  ;;  %v2299_v14 = vsel %vm908_vm1, %v932_v28, %v934_v47  ;;  %v487_v33 = vrot.slane %v2065_v15, 1  ;;  %v505_v5 = vrot.slane %v2200_v57, 1 }
 0x107   :  { %3208 = vst [vmem:[#allocation4_spill] sm:$0xff] %v2299_v14  ;;  %456 = vst.msk [vmem:[#allocation2 + $0x100] sm:$0xff] %vm54_vm0, %v2277_v62  ;;  %v298_v20 = vmax.f32 %v272_v2, 0.0  ;;  %v1032_v22 = vrot.slane %v2065_v15, 6  ;;  %v1050_v18 = vrot.slane %v2200_v57, 6  ;;  %v604_v28 = vrot.slane %v2065_v15, 2 }
 0x108   :  { %v2310_v38 = vsel %vm479_vm2, %v485_v48, %v487_v33  ;;  %v622_v29 = vrot.slane %v2200_v57, 2  ;;  %v2317_v2 = vsel %vm479_vm2, %v503_v21, %v505_v5  ;;  %v3213_v48 = vrot.slane %v2033_v51, 2 }
 0x109   :  { %3209 = vst [vmem:[#allocation5_spill] sm:$0xff] %v2310_v38  ;;  %v2314_v45 = vmul.f32 %v413_v49, %v298_v20  ;;  %3210 = vst [vmem:[#allocation6_spill] sm:$0xff] %v2317_v2  ;;  %v2322_v30 = vsel %vm1024_vm3, %v1030_v52, %v1032_v22  ;;  %v2325_v53 = vsel %vm1024_vm3, %v1048_v59, %v1050_v18  ;;  %v1148_v52 = vrot.slane %v2065_v15, 7 }
 0x10a   :  { %3211 = vst [vmem:[#allocation7_spill] sm:$0xff] %v2322_v30  ;;  %3212 = vst [vmem:[#allocation8_spill] sm:$0xff] %v2325_v53  ;;  %654 = vrot.lane.b32.xlu1 %v2211_v27, %s1717_s26  ;;  %1066 = vrot.lane.b32.xlu0 %v2095_v37, %s1717_s26  ;;  %v2334_v20 = vsel %vm596_vm4, %v3213_v48, %v604_v28  ;;  %v2337_v21 = vsel %vm596_vm4, %v620_v6, %v622_v29  ;;  %v1166_v49 = vrot.slane %v2200_v57, 7 }
 0x10b   :  { %3214 = vst [vmem:[#allocation9_spill] sm:$0xff] %v2334_v20  ;;  %3215 = vst [vmem:[#allocation10_spill] sm:$0xff] %v2337_v21  ;;  %v721_v27 = vrot.slane %v2065_v15, 3  ;;  %v739_v59 = vrot.slane %v2200_v57, 3  ;;  %v918_v37 = vrot.slane %v2059_v10, 5  ;;  %v936_v53 = vrot.slane %v2240_v1, 5 }
 0x10c   :  { %458 = vst.msk [vmem:[#allocation2 + $0x120] sm:$0xff] %vm54_vm0, %v2314_v45  ;;  %v3216_v48 = vrot.slane %v2033_v51, 7  ;;  %v2353_v21 = vsel %vm1140_vm5, %v1164_v41, %v1166_v49  ;;  %v489_v20 = vrot.slane %v2059_v10, 1  ;;  %v507_v30 = vrot.slane %v2240_v1, 1 }
 0x10d   :  { %v3217_v2 = vrot.slane %v2033_v51, 3  ;;  %v2363_v14 = vsel %vm713_vm6, %v737_v56, %v739_v59  ;;  %v2366_v32 = vsel %vm908_vm1, %v916_v23, %v918_v37  ;;  %v1034_v56 = vrot.slane %v2059_v10, 6 }
 0x10e   :  { %v2350_v6 = vsel %vm1140_vm5, %v3216_v48, %v1148_v52  ;;  %3218 = vst [vmem:[#allocation11_spill] sm:$0xff] %v2363_v14  ;;  %3219 = vst [vmem:[#allocation12_spill] sm:$0xff] %v2366_v32  ;;  %v2369_v48 = vsel %vm908_vm1, %v934_v47, %v936_v53  ;;  %771 = vrot.lane.b32.xlu1 %v2219_v61, %s1718_s27  ;;  %638 = vrot.lane.b32.xlu0 %v2102_v42, %s1717_s26  ;;  %v1052_v23 = vrot.slane %v2240_v1, 6  ;;  %v1317_v14 = vld [vmem:[%s3181_s3 + $0xb8] sm:$0xff] }
 0x10f   :  { %v2360_v38 = vsel %vm713_vm6, %v3217_v2, %v721_v27  ;;  %3220 = vst [vmem:[#allocation13_spill] sm:$0xff] %v2369_v48  ;;  %v2376_v41 = vsel %vm479_vm2, %v487_v33, %v489_v20  ;;  %v2379_v2 = vsel %vm479_vm2, %v505_v5, %v507_v30  ;;  %v606_v32 = vrot.slane %v2059_v10, 2 }
 0x110   :  { %3221 = vst [vmem:[#allocation14_spill] sm:$0xff] %v2376_v41  ;;  %3222 = vst [vmem:[#allocation15_spill] sm:$0xff] %v2379_v2  ;;  %v624_v47 = vrot.slane %v2240_v1, 2  ;;  %v1150_v48 = vrot.slane %v2059_v10, 7  ;;  %v832_v61 = vrot.slane %v2015_v36, 4  ;;  %v2388_v42 = vsel %vm1024_vm3, %v1032_v22, %v1034_v56  ;;  %v1316_v41 = vld [vmem:[%s3181_s3 + $0xb0] sm:$0xff] }
 0x111   :  { %v2391_v33 = vsel %vm1024_vm3, %v1050_v18, %v1052_v23  ;;  %v831_v5 = vrot.slane %v2018_v39, 4  ;;  %v2402_v36 = vsel %vm596_vm4, %v604_v28, %v606_v32  ;;  %v723_v39 = vrot.slane %v2059_v10, 3 }
 0x112   :  { %3223 = vst [vmem:[#allocation16_spill] sm:$0xff] %v2391_v33  ;;  %3224 = vst [vmem:[#allocation17_spill] sm:$0xff] %v2402_v36  ;;  %v2405_v22 = vsel %vm596_vm4, %v622_v29, %v624_v47  ;;  %v2408_v18 = vsel %vm1140_vm5, %v1148_v52, %v1150_v48  ;;  %539 = vrot.lane.b32.xlu1 %v2222_v35, %s1716_s25  ;;  %1182 = vrot.lane.b32.xlu0 %v2105_v43, %s1718_s27  ;;  %v3227_v33 = vrot.slane %v2240_v1, 7  ;;  %v1319_v35 = vld [vmem:[%s3181_s3 + $0xc8] sm:$0xff] }
 0x113   :  { %3225 = vst [vmem:[#allocation18_spill] sm:$0xff] %v2405_v22  ;;  %3226 = vst [vmem:[#allocation19_spill] sm:$0xff] %v2408_v18  ;;  %v833_v2 = vsel %vm830_vm7, %v831_v5, %v832_v61  ;;  %v741_v29 = vrot.slane %v2240_v1, 3  ;;  %v1318_v18 = vld [vmem:[%s3181_s3 + $0xc0] sm:$0xff]  ;;  %v2431_v43 = vsel %vm713_vm6, %v721_v27, %v723_v39  ;;  %v1661_v5 = vpack.c.bf16 %v1317_v14, %v1316_v41  ;;  %v1320_v41 = vld [vmem:[%s3181_s3 + $0xd0] sm:$0xff] }
 0x114   :  { %v2419_v28 = vsel %vm1140_vm5, %v1166_v49, %v3227_v33  ;;  %889 = vst.msk [vmem:[#allocation2 + $0x8] sm:$0xff] %vm54_vm0, %v833_v2  ;;  %v938_v49 = vrot.slane %v2234_v7, 5  ;;  %v3198_v33 = vrot.slane %v2098_v40, 1  ;;  %v509_v36 = vrot.slane %v2234_v7, 1 }
 0x115   :  { %3228 = vst [vmem:[#allocation20_spill] sm:$0xff] %v2419_v28  ;;  %v2436_v52 = vsel %vm713_vm6, %v739_v59, %v741_v29  ;;  %v3229_v28 = vrot.slane %v2098_v40, 5  ;;  %1662 = vmatpush1.bf16.msra.mxu0 %v1661_v5  ;;  %v1664_v27 = vpack.c.bf16 %v1319_v35, %v1318_v18  ;;  %v3199_v59 = vrot.slane %v2098_v40, 6  ;;  %1702 = vmatpush1.bf16.msra.mxu1 %v1661_v5 }
 0x116   :  { %v2445_v2 = vsel %vm908_vm1, %v936_v53, %v938_v49  ;;  %v2450_v14 = vsel %vm479_vm2, %v489_v20, %v3198_v33  ;;  %656 = vrot.lane.b32.xlu1 %v2225_v9, %s1717_s26  ;;  %755 = vrot.lane.b32.xlu0 %v2111_v44, %s1718_s27  ;;  %v2464_v53 = vsel %vm479_vm2, %v507_v30, %v509_v36  ;;  %v1054_v20 = vrot.slane %v2234_v7, 6 }
 0x117   :  { %v2441_v22 = vsel %vm908_vm1, %v918_v37, %v3229_v28  ;;  %v1321_v37 = vld [vmem:[%s3181_s3 + $0xd8] sm:$0xff]  ;;  %3230 = vst [vmem:[#allocation21_spill] sm:$0xff] %v2464_v53  ;;  %v3201_v18 = vrot.slane %v2098_v40, 2  ;;  %v3231_v28 = vmov 0.0|0.0   ;;  %v2472_v35 = vsel %vm1024_vm3, %v1034_v56, %v3199_v59 }
 0x118   :  { %1663 = vmatprep.subr.bf16.mxu0 %v3231_v28  ;;  %v626_v5 = vrot.slane %v2234_v7, 2  ;;  %v3200_v9 = vrot.slane %v2098_v40, 7  ;;  %1687 = vmatprep.subr.bf16.mxu1 %v3231_v28  ;;  %v1667_v44 = vpack.c.bf16 %v1321_v37, %v1320_v41  ;;  %v2478_v30 = vsel %vm1024_vm3, %v1052_v23, %v1054_v20 }
 0x119   :  { %v2483_v33 = vsel %vm596_vm4, %v606_v32, %v3201_v18  ;;  %v834_v53 = vrot.slane %v2039_v58, 4  ;;  %1665 = vmatpush1.bf16.msra.mxu0 %v1664_v27  ;;  %v1170_v41 = vrot.slane %v2234_v7, 7  ;;  %v3202_v23 = vrot.slane %v2098_v40, 3  ;;  %1703 = vmatpush1.bf16.msra.mxu1 %v1664_v27  ;;  %v1322_v58 = vld [vmem:[%s3181_s3 + $0xe0] sm:$0xff]  ;;  %v1323_v32 = vld [vmem:[%s3181_s3 + $0xe8] sm:$0xff] }
 0x11a   :  { %v2487_v56 = vsel %vm596_vm4, %v624_v47, %v626_v5  ;;  %v2492_v59 = vsel %vm1140_vm5, %v1150_v48, %v3200_v9  ;;  %773 = vrot.lane.b32.xlu1 %v2230_v34, %s1718_s27  ;;  %952 = vrot.lane.b32.xlu0 %v2116_v46, %s1716_s25  ;;  %v743_v47 = vrot.slane %v2234_v7, 3  ;;  %v940_v27 = vrot.slane %v2277_v62, 5  ;;  %v1324_v46 = vld [vmem:[%s3181_s3 + $0xf0] sm:$0xff]  ;;  %v1325_v34 = vld [vmem:[%s3181_s3 + $0xf8] sm:$0xff] }
 0x11b   :  { %3232 = vst [vmem:[#allocation22_spill] sm:$0xff] %v2487_v56  ;;  %3233 = vst [vmem:[#allocation23_spill] sm:$0xff] %v2492_v59  ;;  %v835_v48 = vsel %vm830_vm7, %v832_v61, %v834_v53  ;;  %1666 = vmatprep.subr.bf16.mxu0 %v3231_v28  ;;  %v3234_v37 = vrot.slane %v2240_v1, 7  ;;  %v2525_v9 = vsel %vm713_vm6, %v723_v39, %v3202_v23  ;;  %1688 = vmatprep.subr.bf16.mxu1 %v3231_v28 }
 0x11c   :  { %890 = vst.msk [vmem:[#allocation2 + $0x18] sm:$0xff] %vm54_vm0, %v835_v48  ;;  %v511_v48 = vrot.slane %v2277_v62, 1  ;;  %v2531_v59 = vsel %vm713_vm6, %v741_v29, %v743_v47  ;;  %v2534_v56 = vsel %vm908_vm1, %v938_v49, %v940_v27  ;;  %v1056_v39 = vrot.slane %v2277_v62, 6 }
 0x11d   :  { %v2520_v61 = vsel %vm1140_vm5, %v3234_v37, %v1170_v41  ;;  %1668 = vmatpush1.bf16.msra.mxu0 %v1667_v44  ;;  %v1670_v37 = vpack.c.bf16 %v1323_v32, %v1322_v58  ;;  %v3203_v23 = vrot.slane %v2135_v0, 5  ;;  %1704 = vmatpush1.bf16.msra.mxu1 %v1667_v44  ;;  %v1673_v29 = vpack.c.bf16 %v1325_v34, %v1324_v46 }
 0x11e   :  { %3235 = vst [vmem:[#allocation24_spill] sm:$0xff] %v2520_v61  ;;  %v2537_v61 = vsel %vm479_vm2, %v509_v36, %v511_v48  ;;  %970 = vrot.lane.b32.xlu1 %v2246_v50, %s1716_s25  ;;  %523 = vrot.lane.b32.xlu0 %v2131_v60, %s1716_s25  ;;  %v926_v49 = vrot.slane %v2125_v55, 5  ;;  %v628_v18 = vrot.slane %v2277_v62, 2  ;;  %v3204_v58 = vrot.slane %v2135_v0, 6 }
 0x11f   :  { %3236 = vst [vmem:[#allocation25_spill] sm:$0xff] %v2537_v61  ;;  %1669 = vmatprep.subr.bf16.mxu0 %v3231_v28  ;;  %v2550_v36 = vsel %vm1024_vm3, %v1054_v20, %v1056_v39  ;;  %v1042_v44 = vrot.slane %v2125_v55, 6  ;;  %v836_v32 = vrot.slane %v2033_v51, 4  ;;  %v1172_v50 = vrot.slane %v2277_v62, 7  ;;  %1689 = vmatprep.subr.bf16.mxu1 %v3231_v28 }
 0x120   :  { %3237 = vst [vmem:[#allocation26_spill] sm:$0xff] %v2550_v36  ;;  %v2559_v60 = vsel %vm908_vm1, %v3203_v23, %v926_v49  ;;  %v2562_v46 = vsel %vm596_vm4, %v626_v5, %v628_v18  ;;  %v3205_v34 = vrot.slane %v2135_v0, 7  ;;  %v1158_v20 = vrot.slane %v2125_v55, 7 }
 0x121   :  { %3238 = vst [vmem:[#allocation27_spill] sm:$0xff] %v2562_v46  ;;  %1671 = vmatpush1.bf16.msra.mxu0 %v1670_v37  ;;  %v2569_v51 = vsel %vm1024_vm3, %v3204_v58, %v1042_v44  ;;  %v837_v36 = vsel %vm830_vm7, %v834_v53, %v836_v32  ;;  %v2573_v61 = vsel %vm1140_vm5, %v1170_v41, %v1172_v50  ;;  %v3206_v23 = vrot.slane %v2161_v16, 4 }
 0x122   :  { %3239 = vst [vmem:[#allocation28_spill] sm:$0xff] %v2569_v51  ;;  %3240 = vst [vmem:[#allocation29_spill] sm:$0xff] %v2573_v61  ;;  %1705 = vmatpush1.bf16.msra.mxu1 %v1670_v37  ;;  %541 = vrot.lane.b32.xlu1 %v2249_v4, %s1716_s25  ;;  %v2584_v5 = vsel %vm1140_vm5, %v3205_v34, %v1158_v20  ;;  %v854_v53 = vrot.slane %v2206_v11, 4  ;;  %v745_v41 = vrot.slane %v2277_v62, 3  ;;  %v928_v58 = vrot.slane %v2175_v26, 5 }
 0x123   :  { %1068 = vrot.lane.b32.xlu0 %v2141_v17, %s1717_s26  ;;  %891 = vst.msk [vmem:[#allocation2 + $0x28] sm:$0xff] %vm54_vm0, %v837_v36  ;;  %3241 = vst [vmem:[#allocation30_spill] sm:$0xff] %v2584_v5  ;;  %1672 = vmatprep.subr.bf16.mxu0 %v3231_v28  ;;  %v942_v4 = vrot.slane %v2268_v13, 5  ;;  %v1044_v37 = vrot.slane %v2175_v26, 6  ;;  %v513_v17 = vrot.slane %v2268_v13, 1  ;;  %v1160_v36 = vrot.slane %v2175_v26, 7 }
 0x124   :  { %1690 = vmatprep.subr.bf16.mxu1 %v3231_v28  ;;  %v855_v11 = vsel %vm830_vm7, %v3206_v23, %v854_v53  ;;  %v2599_v34 = vsel %vm713_vm6, %v743_v47, %v745_v41  ;;  %v2602_v5 = vsel %vm908_vm1, %v926_v49, %v928_v58  ;;  %v1058_v61 = vrot.slane %v2268_v13, 6 }
 0x125   :  { %1674 = vmatpush1.bf16.msra.mxu0 %v1673_v29  ;;  %900 = vst.msk [vmem:[#allocation2 + $0xb8] sm:$0xff] %vm54_vm0, %v855_v11  ;;  %v2607_v51 = vsel %vm908_vm1, %v940_v27, %v942_v4  ;;  %v2610_v28 = vsel %vm1024_vm3, %v1042_v44, %v1044_v37  ;;  %v2613_v46 = vsel %vm479_vm2, %v511_v48, %v513_v17  ;;  %v3243_v27 = vrot.slane %v2161_v16, 5 }
 0x126   :  { %v2616_v47 = vsel %vm1140_vm5, %v1158_v20, %v1160_v36  ;;  %1086 = vrot.lane.b32.xlu1 %v2259_v31, %s1717_s26  ;;  %v2623_v49 = vsel %vm1024_vm3, %v1056_v39, %v1058_v61  ;;  %v630_v48 = vrot.slane %v2268_v13, 2  ;;  %v3245_v11 = vrot.slane %v2161_v16, 6  ;;  %1706 = vmatpush1.bf16.msra.mxu1 %v1673_v29 }
 0x127   :  { %640 = vrot.lane.b32.xlu0 %v2146_v3, %s1717_s26  ;;  %3242 = vst [vmem:[#allocation31_spill] sm:$0xff] %v2623_v49  ;;  %v2628_v44 = vsel %vm908_vm1, %v928_v58, %v3243_v27  ;;  %v838_v31 = vrot.slane %v2065_v15, 4  ;;  %v1174_v23 = vrot.slane %v2268_v13, 7  ;;  %v3247_v3 = vrot.slane %v2161_v16, 7 }
 0x128   :  { %3244 = vst [vmem:[#allocation32_spill] sm:$0xff] %v2628_v44  ;;  %v2634_v20 = vsel %vm1024_vm3, %v1044_v37, %v3245_v11  ;;  %v856_v49 = vrot.slane %v2200_v57, 4  ;;  %v2645_v58 = vsel %vm596_vm4, %v628_v18, %v630_v48  ;;  %v747_v27 = vrot.slane %v2268_v13, 3  ;;  %v418_v44 = vpop.permute.xlu1 %417 }
 0x129   :  { %3246 = vst [vmem:[#allocation33_spill] sm:$0xff] %v2634_v20  ;;  %v2641_v39 = vsel %vm1140_vm5, %v1160_v36, %v3247_v3  ;;  %v944_v37 = vrot.slane %v2314_v45, 5  ;;  %v839_v11 = vsel %vm830_vm7, %v836_v32, %v838_v31  ;;  %v2651_v15 = vsel %vm1140_vm5, %v1172_v50, %v1174_v23 }
 0x12a   :  { %v857_v20 = vsel %vm830_vm7, %v854_v53, %v856_v49  ;;  %658 = vrot.lane.b32.xlu1 %v2274_v8, %s1717_s26  ;;  %892 = vst.msk [vmem:[#allocation2 + $0x38] sm:$0xff] %vm54_vm0, %v839_v11  ;;  %v2661_v57 = vsel %vm713_vm6, %v745_v41, %v747_v27  ;;  %v515_v29 = vrot.slane %v2314_v45, 1  ;;  %v3248_v32 = vmax.f32 %v2271_v12, 0.0 }
 0x12b   :  { %1184 = vrot.lane.b32.xlu0 %v2167_v24, %s1718_s27  ;;  %901 = vst.msk [vmem:[#allocation2 + $0xc8] sm:$0xff] %vm54_vm0, %v857_v20  ;;  %v2664_v18 = vsel %vm908_vm1, %v942_v4, %v944_v37  ;;  %v1060_v8 = vrot.slane %v2314_v45, 6  ;;  %v632_v53 = vrot.slane %v2314_v45, 2  ;;  %v840_v36 = vrot.slane %v2059_v10, 4 }
 0x12c   :  { %v2669_v50 = vmul.f32 %v418_v44, %v3248_v32  ;;  %v2673_v24 = vsel %vm479_vm2, %v513_v17, %v515_v29  ;;  %v1176_v4 = vrot.slane %v2314_v45, 7  ;;  %v858_v44 = vrot.slane %v2240_v1, 4 }
 0x12d   :  { %v2678_v41 = vsel %vm1024_vm3, %v1058_v61, %v1060_v8  ;;  %v2686_v12 = vsel %vm596_vm4, %v630_v48, %v632_v53  ;;  %v841_v17 = vsel %vm830_vm7, %v838_v31, %v840_v36  ;;  %v749_v10 = vrot.slane %v2314_v45, 3 }
 0x12e   :  { %1202 = vrot.lane.b32.xlu1 %v2283_v54, %s1718_s27  ;;  %893 = vst.msk [vmem:[#allocation2 + $0x48] sm:$0xff] %vm54_vm0, %v841_v17  ;;  %v2693_v61 = vsel %vm1140_vm5, %v1174_v23, %v1176_v4  ;;  %v946_v20 = vrot.slane %v2669_v50, 5  ;;  %v859_v54 = vsel %vm830_vm7, %v856_v49, %v858_v44  ;;  %v517_v48 = vrot.slane %v2669_v50, 1 }
 0x12f   :  { %757 = vrot.lane.b32.xlu0 %v2172_v25, %s1718_s27  ;;  %v2698_v25 = vsel %vm713_vm6, %v747_v27, %v749_v10  ;;  %902 = vst.msk [vmem:[#allocation2 + $0xd8] sm:$0xff] %vm54_vm0, %v859_v54  ;;  %v1062_v31 = vrot.slane %v2669_v50, 6  ;;  %v634_v3 = vrot.slane %v2669_v50, 2  ;;  %v842_v23 = vrot.slane %v2098_v40, 4 }
 0x130   :  { %v2703_v1 = vsel %vm908_vm1, %v944_v37, %v946_v20  ;;  %v2713_v49 = vsel %vm479_vm2, %v515_v29, %v517_v48  ;;  %v1178_v27 = vrot.slane %v2669_v50, 7  ;;  %v860_v37 = vrot.slane %v2234_v7, 4  ;;  %v3249_v20 = vld [vmem:[#allocation3_spill] sm:$0xff] }
 0x131   :  { %v751_v11 = vrot.slane %v2669_v50, 3  ;;  %v2719_v32 = vsel %vm1024_vm3, %v1060_v8, %v1062_v31  ;;  %v2722_v17 = vsel %vm596_vm4, %v632_v53, %v634_v3  ;;  %v844_v54 = vrot.slane %v3249_v20, 4 }
 0x132   :  { %775 = vrot.lane.b32.xlu1 %v2286_v63, %s1718_s27  ;;  %v843_v63 = vsel %vm830_vm7, %v840_v36, %v842_v23  ;;  %v861_v29 = vsel %vm830_vm7, %v858_v44, %v860_v37  ;;  %v862_v8 = vrot.slane %v2277_v62, 4  ;;  %v846_v36 = vrot.slane %v2135_v0, 4  ;;  %v3251_v44 = vld [vmem:[#allocation5_spill] sm:$0xff] }
 0x133   :  { %954 = vrot.lane.b32.xlu0 %v2296_v19, %s1716_s25  ;;  %894 = vst.msk [vmem:[#allocation2 + $0x58] sm:$0xff] %vm54_vm0, %v843_v63  ;;  %v2728_v19 = vsel %vm1140_vm5, %v1176_v4, %v1178_v27  ;;  %v2732_v7 = vsel %vm713_vm6, %v749_v10, %v751_v11  ;;  %903 = vst.msk [vmem:[#allocation2 + $0xe8] sm:$0xff] %vm54_vm0, %v861_v29  ;;  %v845_v53 = vsel %vm830_vm7, %v842_v23, %v844_v54  ;;  %v3250_v4 = vld [vmem:[#allocation4_spill] sm:$0xff]  ;;  %v3256_v29 = vld [vmem:[#allocation9_spill] sm:$0xff] }
 0x134   :  { %v848_v48 = vrot.slane %v2125_v55, 4  ;;  %v850_v31 = vrot.slane %v2175_v26, 4  ;;  %895 = vst.msk [vmem:[#allocation2 + $0x68] sm:$0xff] %vm54_vm0, %v845_v53  ;;  %v863_v62 = vsel %vm830_vm7, %v860_v37, %v862_v8  ;;  %v864_v10 = vrot.slane %v2268_v13, 4  ;;  %v3254_v37 = vld [vmem:[#allocation7_spill] sm:$0xff] }
 0x135   :  { %v866_v3 = vrot.slane %v2314_v45, 4  ;;  %v868_v23 = vrot.slane %v2669_v50, 4  ;;  %904 = vst.msk [vmem:[#allocation2 + $0xf8] sm:$0xff] %vm54_vm0, %v863_v62  ;;  %v3252_v27 = vrot.slane %v2161_v16, 4  ;;  %v847_v63 = vsel %vm830_vm7, %v844_v54, %v846_v36  ;;  %v3253_v16 = vld [vmem:[#allocation6_spill] sm:$0xff]  ;;  %v3255_v54 = vld [vmem:[#allocation8_spill] sm:$0xff] }
 0x136   :  { %972 = vrot.lane.b32.xlu1 %v3250_v4, %s1716_s25  ;;  %v849_v55 = vsel %vm830_vm7, %v846_v36, %v848_v48  ;;  %v851_v26 = vsel %vm830_vm7, %v848_v48, %v850_v31  ;;  %v865_v13 = vsel %vm830_vm7, %v862_v8, %v864_v10  ;;  %896 = vst.msk [vmem:[#allocation2 + $0x78] sm:$0xff] %vm54_vm0, %v847_v63  ;;  %v3257_v8 = vld [vmem:[#allocation10_spill] sm:$0xff]  ;;  %v3258_v53 = vld [vmem:[#allocation11_spill] sm:$0xff]  ;;  %v3259_v36 = vld [vmem:[#allocation12_spill] sm:$0xff] }
 0x137   :  { %525 = vrot.lane.b32.xlu0 %v3251_v44, %s1716_s25  ;;  %v853_v11 = vsel %vm830_vm7, %v850_v31, %v3252_v27  ;;  %897 = vst.msk [vmem:[#allocation2 + $0x88] sm:$0xff] %vm54_vm0, %v849_v55  ;;  %898 = vst.msk [vmem:[#allocation2 + $0x98] sm:$0xff] %vm54_vm0, %v851_v26  ;;  %v867_v45 = vsel %vm830_vm7, %v864_v10, %v866_v3  ;;  %v869_v50 = vsel %vm830_vm7, %v866_v3, %v868_v23  ;;  %v3260_v48 = vld [vmem:[#allocation13_spill] sm:$0xff]  ;;  %v3261_v31 = vld [vmem:[#allocation14_spill] sm:$0xff] }
 0x138   :  { %899 = vst.msk [vmem:[#allocation2 + $0xa8] sm:$0xff] %vm54_vm0, %v853_v11  ;;  %905 = vst.msk [vmem:[#allocation2 + $0x108] sm:$0xff] %vm54_vm0, %v865_v13  ;;  %v3265_v4 = vld [vmem:[#allocation18_spill] sm:$0xff]  ;;  %v3266_v44 = vld [vmem:[#allocation19_spill] sm:$0xff] }
 0x139   :  { %906 = vst.msk [vmem:[#allocation2 + $0x118] sm:$0xff] %vm54_vm0, %v867_v45  ;;  %907 = vst.msk [vmem:[#allocation2 + $0x128] sm:$0xff] %vm54_vm0, %v869_v50  ;;  %v3267_v10 = vld [vmem:[#allocation20_spill] sm:$0xff]  ;;  %v3268_v23 = vld [vmem:[#allocation21_spill] sm:$0xff]  ;;  %v3272_v50 = vrot.slane %v2098_v40, 5 }
 0x13a   :  { %543 = vrot.lane.b32.xlu1 %v3253_v16, %s1716_s25  ;;  %v3270_v55 = vld [vmem:[#allocation23_spill] sm:$0xff] }
 0x13b   :  { %1070 = vrot.lane.b32.xlu0 %v3254_v37, %s1717_s26  ;;  %v493_v37 = vrot.slane %v3249_v20, 1 }
 0x13e   :  { %1088 = vrot.lane.b32.xlu1 %v3255_v54, %s1717_s26 }
 0x13f   :  { %642 = vrot.lane.b32.xlu0 %v3256_v29, %s1717_s26  ;;  %v3273_v29 = vrot.slane %v2098_v40, 1 }
 0x142   :  { %660 = vrot.lane.b32.xlu1 %v3257_v8, %s1717_s26  ;;  %v494_v8 = vsel %vm479_vm2, %v3273_v29, %v493_v37  ;;  %v3285_v29 = vrot.slane %v2098_v40, 7 }
 0x143   :  { %1186 = vrot.lane.b32.xlu0 %v2350_v6, %s1718_s27  ;;  %v3262_v6 = vld [vmem:[#allocation15_spill] sm:$0xff] }
 0x146   :  { %1204 = vrot.lane.b32.xlu1 %v2353_v21, %s1718_s27  ;;  %v3264_v21 = vld [vmem:[#allocation17_spill] sm:$0xff] }
 0x147   :  { %759 = vrot.lane.b32.xlu0 %v2360_v38, %s1718_s27  ;;  %v3263_v38 = vld [vmem:[#allocation16_spill] sm:$0xff] }
 0x14a   :  { %777 = vrot.lane.b32.xlu1 %v3258_v53, %s1718_s27  ;;  %v1038_v53 = vrot.slane %v3249_v20, 6 }
 0x14b   :  { %956 = vrot.lane.b32.xlu0 %v3259_v36, %s1716_s25 }
 0x14e   :  { %974 = vrot.lane.b32.xlu1 %v3260_v48, %s1716_s25  ;;  %v3274_v48 = vrot.slane %v2098_v40, 6 }
 0x14f   :  { %527 = vrot.lane.b32.xlu0 %v3261_v31, %s1716_s25 }
 0x150   :  { %v1039_v31 = vsel %vm1024_vm3, %v3274_v48, %v1038_v53  ;;  %v3286_v48 = vrot.slane %v2098_v40, 3 }
 0x152   :  { %545 = vrot.lane.b32.xlu1 %v3262_v6, %s1716_s25  ;;  %v3275_v6 = vld [vmem:[#allocation25_spill] sm:$0xff] }
 0x153   :  { %1072 = vrot.lane.b32.xlu0 %v2388_v42, %s1717_s26 }
 0x156   :  { %1090 = vrot.lane.b32.xlu1 %v3263_v38, %s1717_s26 }
 0x157   :  { %644 = vrot.lane.b32.xlu0 %v3264_v21, %s1717_s26  ;;  %v3276_v21 = vld [vmem:[#allocation26_spill] sm:$0xff] }
 0x15a   :  { %662 = vrot.lane.b32.xlu1 %v3265_v4, %s1717_s26 }
 0x15b   :  { %1188 = vrot.lane.b32.xlu0 %v3266_v44, %s1718_s27 }
 0x15c   :  { %v949_v62 = vpop.permute.xlu0 %948 }
 0x15d   :  { %1005 = vst.msk [vmem:[#allocation2 + $0x8] sm:$0xff] %vm576_vm8, %v949_v62  ;;  %v3277_v62 = vld [vmem:[#allocation27_spill] sm:$0xff] }
 0x15e   :  { %1206 = vrot.lane.b32.xlu1 %v3267_v10, %s1718_s27  ;;  %v3278_v10 = vld [vmem:[#allocation28_spill] sm:$0xff] }
 0x15f   :  { %761 = vrot.lane.b32.xlu0 %v2431_v43, %s1718_s27 }
 0x160   :  { %v520_v42 = vpop.permute.xlu0 %519 }
 0x161   :  { %577 = vst.msk [vmem:[#allocation2] sm:$0xff] %vm576_vm8, %v520_v42 }
 0x162   :  { %779 = vrot.lane.b32.xlu1 %v2436_v52, %s1718_s27 }
 0x163   :  { %958 = vrot.lane.b32.xlu0 %v2441_v22, %s1716_s25 }
 0x164   :  { %v1065_v3 = vpop.permute.xlu0 %1064 }
 0x165   :  { %1121 = vst.msk [vmem:[#allocation2 + $0x8] sm:$0xff] %vm693_vm9, %v1065_v3 }
 0x166   :  { %976 = vrot.lane.b32.xlu1 %v2445_v2, %s1716_s25 }
 0x167   :  { %529 = vrot.lane.b32.xlu0 %v2450_v14, %s1716_s25 }
 0x168   :  { %v637_v43 = vpop.permute.xlu0 %636 }
 0x169   :  { %694 = vst.msk [vmem:[#allocation2] sm:$0xff] %vm693_vm9, %v637_v43 }
 0x16a   :  { %547 = vrot.lane.b32.xlu1 %v3268_v23, %s1716_s25  ;;  %v3280_v23 = vld [vmem:[#allocation30_spill] sm:$0xff] }
 0x16b   :  { %1074 = vrot.lane.b32.xlu0 %v2472_v35, %s1717_s26  ;;  %v3269_v35 = vld [vmem:[#allocation22_spill] sm:$0xff] }
 0x16c   :  { %v536_v22 = vpop.permute.xlu1 %535  ;;  %v1181_v52 = vpop.permute.xlu0 %1180 }
 0x16d   :  { %585 = vst.msk [vmem:[#allocation2 + $0x80] sm:$0xff] %vm576_vm8, %v536_v22 }
 0x16e   :  { %1237 = vst.msk [vmem:[#allocation2 + $0x8] sm:$0xff] %vm810_vm10, %v1181_v52  ;;  %1092 = vrot.lane.b32.xlu1 %v2478_v30, %s1717_s26  ;;  %v3271_v30 = vld [vmem:[#allocation24_spill] sm:$0xff] }
 0x16f   :  { %646 = vrot.lane.b32.xlu0 %v2483_v33, %s1717_s26  ;;  %v922_v33 = vrot.slane %v3249_v20, 5 }
 0x170   :  { %v653_v2 = vpop.permute.xlu1 %652  ;;  %v754_v14 = vpop.permute.xlu0 %753 }
 0x171   :  { %702 = vst.msk [vmem:[#allocation2 + $0x80] sm:$0xff] %vm693_vm9, %v653_v2  ;;  %v923_v16 = vsel %vm908_vm1, %v3272_v50, %v922_v33 }
 0x172   :  { %811 = vst.msk [vmem:[#allocation2] sm:$0xff] %vm810_vm10, %v754_v14  ;;  %664 = vrot.lane.b32.xlu1 %v3269_v35, %s1717_s26 }
 0x173   :  { %1190 = vrot.lane.b32.xlu0 %v3270_v55, %s1718_s27 }
 0x174   :  { %v770_v26 = vpop.permute.xlu1 %769  ;;  %v951_v27 = vpop.permute.xlu0 %950 }
 0x175   :  { %v1257_v11 = vld [vmem:[#allocation2 + $0x8] sm:$0xff]  ;;  %819 = vst.msk [vmem:[#allocation2 + $0x80] sm:$0xff] %vm810_vm10, %v770_v26 }
 0x176   :  { %1006 = vst.msk [vmem:[#allocation2 + $0x18] sm:$0xff] %vm576_vm8, %v951_v27  ;;  %1397 = vmatprep.mubr.f32.mxu0 %v1257_v11  ;;  %1208 = vrot.lane.b32.xlu1 %v3271_v30, %s1718_s27 }
 0x177   :  { %763 = vrot.lane.b32.xlu0 %v2525_v9, %s1718_s27 }
 0x178   :  { %v538_v63 = vpop.permute.xlu1 %537  ;;  %v522_v13 = vpop.permute.xlu0 %521 }
 0x179   :  { %v1256_v45 = vld [vmem:[#allocation2] sm:$0xff]  ;;  %586 = vst.msk [vmem:[#allocation2 + $0x90] sm:$0xff] %vm576_vm8, %v538_v63  ;;  %578 = vst.msk [vmem:[#allocation2 + $0x10] sm:$0xff] %vm576_vm8, %v522_v13  ;;  %v610_v13 = vrot.slane %v3249_v20, 2 }
 0x17a   :  { %1398 = vmatmul.mubr.f32.vlgmr.msra.gmra.mrb[20].mxu0 %v1256_v45  ;;  %781 = vrot.lane.b32.xlu1 %v2531_v59, %s1718_s27 }
 0x17b   :  { %960 = vrot.lane.b32.xlu0 %v923_v16, %s1716_s25  ;;  %v3284_v16 = vrot.slane %v2098_v40, 2 }
 0x17c   :  { %v655_v9 = vpop.permute.xlu1 %654  ;;  %v1067_v54 = vpop.permute.xlu0 %1066 }
 0x17d   :  { %703 = vst.msk [vmem:[#allocation2 + $0x90] sm:$0xff] %vm693_vm9, %v655_v9  ;;  %1122 = vst.msk [vmem:[#allocation2 + $0x18] sm:$0xff] %vm693_vm9, %v1067_v54  ;;  %v611_v9 = vsel %vm596_vm4, %v3284_v16, %v610_v13  ;;  %v1154_v54 = vrot.slane %v3249_v20, 7 }
 0x17e   :  { %978 = vrot.lane.b32.xlu1 %v2534_v56, %s1716_s25 }
 0x17f   :  { %531 = vrot.lane.b32.xlu0 %v494_v8, %s1716_s25  ;;  %v1155_v8 = vsel %vm1140_vm5, %v3285_v29, %v1154_v54 }
 0x180   :  { %v772_v59 = vpop.permute.xlu1 %771  ;;  %v639_v36 = vpop.permute.xlu0 %638 }
 0x181   :  { %820 = vst.msk [vmem:[#allocation2 + $0x90] sm:$0xff] %vm810_vm10, %v772_v59  ;;  %v727_v59 = vrot.slane %v3249_v20, 3 }
 0x182   :  { %695 = vst.msk [vmem:[#allocation2 + $0x10] sm:$0xff] %vm693_vm9, %v639_v36  ;;  %549 = vrot.lane.b32.xlu1 %v3275_v6, %s1716_s25 }
 0x183   :  { %1076 = vrot.lane.b32.xlu0 %v1039_v31, %s1717_s26  ;;  %v728_v31 = vsel %vm713_vm6, %v3286_v48, %v727_v59 }
 0x184   :  { %v540_v56 = vpop.permute.xlu1 %539  ;;  %v1183_v38 = vpop.permute.xlu0 %1182 }
 0x185   :  { %587 = vst.msk [vmem:[#allocation2 + $0xa0] sm:$0xff] %vm576_vm8, %v540_v56 }
 0x186   :  { %1238 = vst.msk [vmem:[#allocation2 + $0x18] sm:$0xff] %vm810_vm10, %v1183_v38  ;;  %1094 = vrot.lane.b32.xlu1 %v3276_v21, %s1717_s26  ;;  %v3288_v21 = vrot.slane %v2135_v0, 1 }
 0x187   :  { %964 = vrot.lane.b32.xlu0 %v2559_v60, %s1716_s25  ;;  %v3279_v60 = vld [vmem:[#allocation29_spill] sm:$0xff] }
 0x188   :  { %v657_v4 = vpop.permute.xlu1 %656  ;;  %v756_v44 = vpop.permute.xlu0 %755 }
 0x189   :  { %704 = vst.msk [vmem:[#allocation2 + $0xa0] sm:$0xff] %vm693_vm9, %v657_v4  ;;  %v496_v4 = vsel %vm479_vm2, %v493_v37, %v3288_v21 }
 0x18a   :  { %812 = vst.msk [vmem:[#allocation2 + $0x10] sm:$0xff] %vm810_vm10, %v756_v44  ;;  %666 = vrot.lane.b32.xlu1 %v3277_v62, %s1717_s26  ;;  %v3289_v62 = vrot.slane %v2135_v0, 6 }
 0x18b   :  { %1080 = vrot.lane.b32.xlu0 %v3278_v10, %s1717_s26 }
 0x18c   :  { %v774_v42 = vpop.permute.xlu1 %773  ;;  %v953_v3 = vpop.permute.xlu0 %952  ;;  %v1041_v10 = vsel %vm1024_vm3, %v1038_v53, %v3289_v62  ;;  %v3291_v53 = vrot.slane %v2135_v0, 7 }
 0x18d   :  { %v1259_v43 = vld [vmem:[#allocation2 + $0x18] sm:$0xff]  ;;  %821 = vst.msk [vmem:[#allocation2 + $0xa0] sm:$0xff] %vm810_vm10, %v774_v42 }
 0x18e   :  { %1007 = vst.msk [vmem:[#allocation2 + $0x28] sm:$0xff] %vm576_vm8, %v953_v3  ;;  %1402 = vmatprep.mubr.f32.mxu0 %v1259_v43  ;;  %1210 = vrot.lane.b32.xlu1 %v3279_v60, %s1718_s27  ;;  %v3290_v3 = vrot.slane %v2135_v0, 2  ;;  %v1157_v60 = vsel %vm1140_vm5, %v1154_v54, %v3291_v53 }
 0x18f   :  { %1196 = vrot.lane.b32.xlu0 %v3280_v23, %s1718_s27 }
 0x190   :  { %v971_v22 = vpop.permute.xlu1 %970  ;;  %v524_v52 = vpop.permute.xlu0 %523  ;;  %v613_v43 = vsel %vm596_vm4, %v610_v13, %v3290_v3 }
 0x191   :  { %v1258_v2 = vld [vmem:[#allocation2 + $0x10] sm:$0xff]  ;;  %1016 = vst.msk [vmem:[#allocation2 + $0xb8] sm:$0xff] %vm576_vm8, %v971_v22  ;;  %579 = vst.msk [vmem:[#allocation2 + $0x20] sm:$0xff] %vm576_vm8, %v524_v52 }
 0x192   :  { %1403 = vmatmul.mubr.f32.gmra.mrb[22].mxu0 %v1258_v2  ;;  %783 = vrot.lane.b32.xlu1 %v2599_v34, %s1718_s27 }
 0x193   :  { %966 = vrot.lane.b32.xlu0 %v2602_v5, %s1716_s25 }
 0x194   :  { %v542_v14 = vpop.permute.xlu1 %541 }
 0x195   :  { %v1069_v35 = vpop.permute.xlu0 %1068  ;;  %588 = vst.msk [vmem:[#allocation2 + $0xb0] sm:$0xff] %vm576_vm8, %v542_v14 }
 0x196   :  { %1123 = vst.msk [vmem:[#allocation2 + $0x28] sm:$0xff] %vm693_vm9, %v1069_v35  ;;  %980 = vrot.lane.b32.xlu1 %v2607_v51, %s1716_s25  ;;  %v3281_v51 = vld [vmem:[#allocation31_spill] sm:$0xff] }
 0x197   :  { %1082 = vrot.lane.b32.xlu0 %v2610_v28, %s1717_s26  ;;  %v3282_v28 = vld [vmem:[#allocation32_spill] sm:$0xff] }
 0x198   :  { %v1087_v55 = vpop.permute.xlu1 %1086 }
 0x199   :  { %v641_v26 = vpop.permute.xlu0 %640  ;;  %1132 = vst.msk [vmem:[#allocation2 + $0xb8] sm:$0xff] %vm693_vm9, %v1087_v55 }
 0x19a   :  { %696 = vst.msk [vmem:[#allocation2 + $0x20] sm:$0xff] %vm693_vm9, %v641_v26  ;;  %551 = vrot.lane.b32.xlu1 %v2613_v46, %s1716_s25  ;;  %v3283_v46 = vld [vmem:[#allocation33_spill] sm:$0xff] }
 0x19b   :  { %1198 = vrot.lane.b32.xlu0 %v2616_v47, %s1718_s27 }
 0x19c   :  { %v659_v34 = vpop.permute.xlu1 %658 }
 0x19d   :  { %v1185_v5 = vpop.permute.xlu0 %1184  ;;  %705 = vst.msk [vmem:[#allocation2 + $0xb0] sm:$0xff] %vm693_vm9, %v659_v34 }
 0x19e   :  { %1239 = vst.msk [vmem:[#allocation2 + $0x28] sm:$0xff] %vm810_vm10, %v1185_v5  ;;  %1096 = vrot.lane.b32.xlu1 %v3281_v51, %s1717_s26 }
 0x19f   :  { %968 = vrot.lane.b32.xlu0 %v3282_v28, %s1716_s25 }
 0x1a0   :  { %v1203_v27 = vpop.permute.xlu1 %1202 }
 0x1a1   :  { %v758_v11 = vpop.permute.xlu0 %757  ;;  %1248 = vst.msk [vmem:[#allocation2 + $0xb8] sm:$0xff] %vm810_vm10, %v1203_v27 }
 0x1a2   :  { %813 = vst.msk [vmem:[#allocation2 + $0x20] sm:$0xff] %vm810_vm10, %v758_v11  ;;  %668 = vrot.lane.b32.xlu1 %v2645_v58, %s1717_s26 }
 0x1a3   :  { %1084 = vrot.lane.b32.xlu0 %v3283_v46, %s1717_s26 }
 0x1a4   :  { %v776_v47 = vpop.permute.xlu1 %775 }
 0x1a5   :  { %v955_v30 = vpop.permute.xlu0 %954  ;;  %v1261_v63 = vld [vmem:[#allocation2 + $0x28] sm:$0xff]  ;;  %822 = vst.msk [vmem:[#allocation2 + $0xb0] sm:$0xff] %vm810_vm10, %v776_v47 }
 0x1a6   :  { %1008 = vst.msk [vmem:[#allocation2 + $0x38] sm:$0xff] %vm576_vm8, %v955_v30  ;;  %1407 = vmatprep.mubr.f32.mxu0 %v1261_v63  ;;  %1212 = vrot.lane.b32.xlu1 %v2651_v15, %s1718_s27 }
 0x1a7   :  { %1200 = vrot.lane.b32.xlu0 %v2641_v39, %s1718_s27 }
 0x1a8   :  { %v973_v58 = vpop.permute.xlu1 %972  ;;  %v1279_v3 = vld [vmem:[#allocation2 + $0xb8] sm:$0xff] }
 0x1a9   :  { %v526_v45 = vpop.permute.xlu0 %525  ;;  %v1260_v50 = vld [vmem:[#allocation2 + $0x20] sm:$0xff]  ;;  %1017 = vst.msk [vmem:[#allocation2 + $0xc8] sm:$0xff] %vm576_vm8, %v973_v58 }
 0x1aa   :  { %580 = vst.msk [vmem:[#allocation2 + $0x30] sm:$0xff] %vm576_vm8, %v526_v45  ;;  %1408 = vmatmul.mubr.f32.gmra.mrb[24].mxu0 %v1260_v50  ;;  %785 = vrot.lane.b32.xlu1 %v2661_v57, %s1718_s27 }
 0x1ab   :  { %648 = vrot.lane.b32.xlu0 %v611_v9, %s1717_s26 }
 0x1ac   :  { %v544_v39 = vpop.permute.xlu1 %543 }
 0x1ad   :  { %v1071_v15 = vpop.permute.xlu0 %1070  ;;  %589 = vst.msk [vmem:[#allocation2 + $0xc0] sm:$0xff] %vm576_vm8, %v544_v39 }
 0x1ae   :  { %1124 = vst.msk [vmem:[#allocation2 + $0x38] sm:$0xff] %vm693_vm9, %v1071_v15  ;;  %982 = vrot.lane.b32.xlu1 %v2664_v18, %s1716_s25  ;;  %v3287_v18 = vrot.slane %v2135_v0, 5 }
 0x1af   :  { %1192 = vrot.lane.b32.xlu0 %v1155_v8, %s1718_s27 }
 0x1b0   :  { %v1089_v57 = vpop.permute.xlu1 %1088  ;;  %v925_v38 = vsel %vm908_vm1, %v922_v33, %v3287_v18 }
 0x1b1   :  { %v643_v36 = vpop.permute.xlu0 %642  ;;  %1133 = vst.msk [vmem:[#allocation2 + $0xc8] sm:$0xff] %vm693_vm9, %v1089_v57 }
 0x1b2   :  { %697 = vst.msk [vmem:[#allocation2 + $0x30] sm:$0xff] %vm693_vm9, %v643_v36  ;;  %553 = vrot.lane.b32.xlu1 %v2673_v24, %s1716_s25 }
 0x1b3   :  { %765 = vrot.lane.b32.xlu0 %v728_v31, %s1718_s27  ;;  %v1272_v31 = vld [vmem:[#allocation2 + $0x80] sm:$0xff] }
 0x1b4   :  { %v661_v6 = vpop.permute.xlu1 %660 }
 0x1b5   :  { %v1187_v56 = vpop.permute.xlu0 %1186  ;;  %706 = vst.msk [vmem:[#allocation2 + $0xc0] sm:$0xff] %vm693_vm9, %v661_v6 }
 0x1b6   :  { %1240 = vst.msk [vmem:[#allocation2 + $0x38] sm:$0xff] %vm810_vm10, %v1187_v56  ;;  %1098 = vrot.lane.b32.xlu1 %v2678_v41, %s1717_s26 }
 0x1b7   :  { %962 = vrot.lane.b32.xlu0 %v925_v38, %s1716_s25 }
 0x1b8   :  { %v1205_v40 = vpop.permute.xlu1 %1204 }
 0x1b9   :  { %v760_v24 = vpop.permute.xlu0 %759  ;;  %1249 = vst.msk [vmem:[#allocation2 + $0xc8] sm:$0xff] %vm810_vm10, %v1205_v40 }
 0x1ba   :  { %814 = vst.msk [vmem:[#allocation2 + $0x30] sm:$0xff] %vm810_vm10, %v760_v24  ;;  %670 = vrot.lane.b32.xlu1 %v2686_v12, %s1717_s26 }
 0x1bb   :  { %533 = vrot.lane.b32.xlu0 %v496_v4, %s1716_s25  ;;  %v1274_v4 = vld [vmem:[#allocation2 + $0x90] sm:$0xff] }
 0x1bc   :  { %v778_v41 = vpop.permute.xlu1 %777 }
 0x1bd   :  { %v957_v33 = vpop.permute.xlu0 %956  ;;  %v1263_v44 = vld [vmem:[#allocation2 + $0x38] sm:$0xff]  ;;  %823 = vst.msk [vmem:[#allocation2 + $0xc0] sm:$0xff] %vm810_vm10, %v778_v41 }
 0x1be   :  { %1009 = vst.msk [vmem:[#allocation2 + $0x48] sm:$0xff] %vm576_vm8, %v957_v33  ;;  %1412 = vmatprep.mubr.f32.mxu0 %v1263_v44  ;;  %1214 = vrot.lane.b32.xlu1 %v2693_v61, %s1718_s27 }
 0x1bf   :  { %1078 = vrot.lane.b32.xlu0 %v1041_v10, %s1717_s26 }
 0x1c0   :  { %v975_v12 = vpop.permute.xlu1 %974  ;;  %v1281_v53 = vld [vmem:[#allocation2 + $0xc8] sm:$0xff] }
 0x1c1   :  { %v528_v37 = vpop.permute.xlu0 %527  ;;  %v1262_v42 = vld [vmem:[#allocation2 + $0x30] sm:$0xff]  ;;  %1018 = vst.msk [vmem:[#allocation2 + $0xd8] sm:$0xff] %vm576_vm8, %v975_v12 }
 0x1c2   :  { %581 = vst.msk [vmem:[#allocation2 + $0x40] sm:$0xff] %vm576_vm8, %v528_v37  ;;  %1413 = vmatmul.mubr.f32.gmra.mrb[26].mxu0 %v1262_v42  ;;  %787 = vrot.lane.b32.xlu1 %v2698_v25, %s1718_s27  ;;  %v3292_v25 = vrot.slane %v2135_v0, 3  ;;  %v1276_v42 = vld [vmem:[#allocation2 + $0xa0] sm:$0xff] }
 0x1c3   :  { %650 = vrot.lane.b32.xlu0 %v613_v43, %s1717_s26 }
 0x1c4   :  { %v546_v61 = vpop.permute.xlu1 %545  ;;  %v730_v52 = vsel %vm713_vm6, %v727_v59, %v3292_v25  ;;  %v1280_v25 = vld [vmem:[#allocation2 + $0xc0] sm:$0xff] }
 0x1c5   :  { %v1073_v20 = vpop.permute.xlu0 %1072  ;;  %590 = vst.msk [vmem:[#allocation2 + $0xd0] sm:$0xff] %vm576_vm8, %v546_v61 }
 0x1c6   :  { %1125 = vst.msk [vmem:[#allocation2 + $0x48] sm:$0xff] %vm693_vm9, %v1073_v20  ;;  %984 = vrot.lane.b32.xlu1 %v2703_v1, %s1716_s25  ;;  %v1278_v20 = vld [vmem:[#allocation2 + $0xb0] sm:$0xff] }
 0x1c7   :  { %1194 = vrot.lane.b32.xlu0 %v1157_v60, %s1718_s27 }
 0x1c8   :  { %v1091_v23 = vpop.permute.xlu1 %1090 }
 0x1c9   :  { %v645_v22 = vpop.permute.xlu0 %644  ;;  %1134 = vst.msk [vmem:[#allocation2 + $0xd8] sm:$0xff] %vm693_vm9, %v1091_v23 }
 0x1ca   :  { %698 = vst.msk [vmem:[#allocation2 + $0x40] sm:$0xff] %vm693_vm9, %v645_v22  ;;  %555 = vrot.lane.b32.xlu1 %v2713_v49, %s1716_s25 }
 0x1cb   :  { %767 = vrot.lane.b32.xlu0 %v730_v52, %s1718_s27 }
 0x1cc   :  { %v663_v2 = vpop.permute.xlu1 %662 }
 0x1cd   :  { %v1189_v14 = vpop.permute.xlu0 %1188  ;;  %707 = vst.msk [vmem:[#allocation2 + $0xd0] sm:$0xff] %vm693_vm9, %v663_v2 }
 0x1ce   :  { %1241 = vst.msk [vmem:[#allocation2 + $0x48] sm:$0xff] %vm810_vm10, %v1189_v14  ;;  %1100 = vrot.lane.b32.xlu1 %v2719_v32, %s1717_s26 }
 0x1d0   :  { %v1207_v1 = vpop.permute.xlu1 %1206 }
 0x1d1   :  { %v762_v35 = vpop.permute.xlu0 %761  ;;  %1250 = vst.msk [vmem:[#allocation2 + $0xd8] sm:$0xff] %vm810_vm10, %v1207_v1 }
 0x1d2   :  { %815 = vst.msk [vmem:[#allocation2 + $0x40] sm:$0xff] %vm810_vm10, %v762_v35  ;;  %672 = vrot.lane.b32.xlu1 %v2722_v17, %s1717_s26 }
 0x1d4   :  { %v780_v0 = vpop.permute.xlu1 %779 }
 0x1d5   :  { %v959_v49 = vpop.permute.xlu0 %958  ;;  %v1265_v55 = vld [vmem:[#allocation2 + $0x48] sm:$0xff]  ;;  %824 = vst.msk [vmem:[#allocation2 + $0xd0] sm:$0xff] %vm810_vm10, %v780_v0 }
 0x1d6   :  { %1010 = vst.msk [vmem:[#allocation2 + $0x58] sm:$0xff] %vm576_vm8, %v959_v49  ;;  %1417 = vmatprep.mubr.f32.mxu0 %v1265_v55  ;;  %1216 = vrot.lane.b32.xlu1 %v2728_v19, %s1718_s27 }
 0x1d8   :  { %v977_v32 = vpop.permute.xlu1 %976  ;;  %v1283_v52 = vld [vmem:[#allocation2 + $0xd8] sm:$0xff] }
 0x1d9   :  { %v530_v26 = vpop.permute.xlu0 %529  ;;  %v1264_v34 = vld [vmem:[#allocation2 + $0x40] sm:$0xff]  ;;  %1019 = vst.msk [vmem:[#allocation2 + $0xe8] sm:$0xff] %vm576_vm8, %v977_v32 }
 0x1da   :  { %582 = vst.msk [vmem:[#allocation2 + $0x50] sm:$0xff] %vm576_vm8, %v530_v26  ;;  %1418 = vmatmul.mubr.f32.gmra.mrb[28].mxu0 %v1264_v34  ;;  %789 = vrot.lane.b32.xlu1 %v2732_v7, %s1718_s27 }
 0x1dc   :  { %v548_v17 = vpop.permute.xlu1 %547  ;;  %v1282_v35 = vld [vmem:[#allocation2 + $0xd0] sm:$0xff] }
 0x1dd   :  { %v1075_v5 = vpop.permute.xlu0 %1074  ;;  %591 = vst.msk [vmem:[#allocation2 + $0xe0] sm:$0xff] %vm576_vm8, %v548_v17 }
 0x1de   :  { %1126 = vst.msk [vmem:[#allocation2 + $0x58] sm:$0xff] %vm693_vm9, %v1075_v5 }
 0x1e0   :  { %v1093_v51 = vpop.permute.xlu1 %1092 }
 0x1e1   :  { %v647_v28 = vpop.permute.xlu0 %646  ;;  %1135 = vst.msk [vmem:[#allocation2 + $0xe8] sm:$0xff] %vm693_vm9, %v1093_v51 }
 0x1e2   :  { %699 = vst.msk [vmem:[#allocation2 + $0x50] sm:$0xff] %vm693_vm9, %v647_v28 }
 0x1e4   :  { %v665_v19 = vpop.permute.xlu1 %664 }
 0x1e5   :  { %v1191_v27 = vpop.permute.xlu0 %1190  ;;  %708 = vst.msk [vmem:[#allocation2 + $0xe0] sm:$0xff] %vm693_vm9, %v665_v19 }
 0x1e6   :  { %1242 = vst.msk [vmem:[#allocation2 + $0x58] sm:$0xff] %vm810_vm10, %v1191_v27 }
 0x1e8   :  { %v1209_v11 = vpop.permute.xlu1 %1208 }
 0x1e9   :  { %v764_v7 = vpop.permute.xlu0 %763  ;;  %1251 = vst.msk [vmem:[#allocation2 + $0xe8] sm:$0xff] %vm810_vm10, %v1209_v11 }
 0x1ea   :  { %816 = vst.msk [vmem:[#allocation2 + $0x50] sm:$0xff] %vm810_vm10, %v764_v7 }
 0x1ec   :  { %v782_v46 = vpop.permute.xlu1 %781 }
 0x1ed   :  { %v961_v47 = vpop.permute.xlu0 %960  ;;  %v1267_v30 = vld [vmem:[#allocation2 + $0x58] sm:$0xff]  ;;  %825 = vst.msk [vmem:[#allocation2 + $0xe0] sm:$0xff] %vm810_vm10, %v782_v46 }
 0x1ee   :  { %1011 = vst.msk [vmem:[#allocation2 + $0x68] sm:$0xff] %vm576_vm8, %v961_v47  ;;  %1422 = vmatprep.mubr.f32.mxu0 %v1267_v30 }
 0x1f0   :  { %v979_v63 = vpop.permute.xlu1 %978  ;;  %v1285_v0 = vld [vmem:[#allocation2 + $0xe8] sm:$0xff] }
 0x1f1   :  { %v532_v13 = vpop.permute.xlu0 %531  ;;  %v1266_v58 = vld [vmem:[#allocation2 + $0x50] sm:$0xff]  ;;  %1020 = vst.msk [vmem:[#allocation2 + $0xf8] sm:$0xff] %vm576_vm8, %v979_v63 }
 0x1f2   :  { %583 = vst.msk [vmem:[#allocation2 + $0x60] sm:$0xff] %vm576_vm8, %v532_v13  ;;  %1423 = vmatmul.mubr.f32.gmra.mrb[30].mxu0 %v1266_v58 }
 0x1f4   :  { %v550_v45 = vpop.permute.xlu1 %549  ;;  %v1284_v32 = vld [vmem:[#allocation2 + $0xe0] sm:$0xff] }
 0x1f5   :  { %v1077_v50 = vpop.permute.xlu0 %1076  ;;  %592 = vst.msk [vmem:[#allocation2 + $0xf0] sm:$0xff] %vm576_vm8, %v550_v45 }
 0x1f6   :  { %1127 = vst.msk [vmem:[#allocation2 + $0x68] sm:$0xff] %vm693_vm9, %v1077_v50  ;;  %v3080_v50 = vld [vmem:[%s3183_s4] ss:$0 sm:$0xff] }
 0x1f8   :  { %v1095_v16 = vpop.permute.xlu1 %1094 }
 0x1f9   :  { %v965_v9 = vpop.permute.xlu0 %964  ;;  %1136 = vst.msk [vmem:[#allocation2 + $0xf8] sm:$0xff] %vm693_vm9, %v1095_v16 }
 0x1fa   :  { %1013 = vst.msk [vmem:[#allocation2 + $0x88] sm:$0xff] %vm576_vm8, %v965_v9 }
 0x1fc   :  { %v667_v54 = vpop.permute.xlu1 %666 }
 0x1fd   :  { %v1081_v39 = vpop.permute.xlu0 %1080  ;;  %709 = vst.msk [vmem:[#allocation2 + $0xf0] sm:$0xff] %vm693_vm9, %v667_v54 }
 0x1fe   :  { %1129 = vst.msk [vmem:[#allocation2 + $0x88] sm:$0xff] %vm693_vm9, %v1081_v39 }
 0x200   :  { %v1211_v15 = vpop.permute.xlu1 %1210 }
 0x201   :  { %v1197_v29 = vpop.permute.xlu0 %1196  ;;  %1252 = vst.msk [vmem:[#allocation2 + $0xf8] sm:$0xff] %vm810_vm10, %v1211_v15 }
 0x202   :  { %1245 = vst.msk [vmem:[#allocation2 + $0x88] sm:$0xff] %vm810_vm10, %v1197_v29 }
 0x204   :  { %v784_v8 = vpop.permute.xlu1 %783 }
 0x205   :  { %v967_v59 = vpop.permute.xlu0 %966  ;;  %826 = vst.msk [vmem:[#allocation2 + $0xf0] sm:$0xff] %vm810_vm10, %v784_v8 }
 0x206   :  { %1014 = vst.msk [vmem:[#allocation2 + $0x98] sm:$0xff] %vm576_vm8, %v967_v59 }
 0x208   :  { %v981_v57 = vpop.permute.xlu1 %980  ;;  %v1287_v26 = vld [vmem:[#allocation2 + $0xf8] sm:$0xff] }
 0x209   :  { %v1083_v36 = vpop.permute.xlu0 %1082  ;;  %v1273_v48 = vld [vmem:[#allocation2 + $0x88] sm:$0xff]  ;;  %1021 = vst.msk [vmem:[#allocation2 + $0x108] sm:$0xff] %vm576_vm8, %v981_v57 }
 0x20a   :  { %1130 = vst.msk [vmem:[#allocation2 + $0x98] sm:$0xff] %vm693_vm9, %v1083_v36  ;;  %1437 = vmatprep.mubr.f32.mxu1 %v1273_v48 }
 0x20b   :  { %1438 = vmatmul.mubr.f32.vlgmr.msra.gmra.mrb[0].mxu1 %v1272_v31 }
 0x20c   :  { %v552_v6 = vpop.permute.xlu1 %551  ;;  %v1286_v5 = vld [vmem:[#allocation2 + $0xf0] sm:$0xff] }
 0x20d   :  { %v1199_v56 = vpop.permute.xlu0 %1198  ;;  %593 = vst.msk [vmem:[#allocation2 + $0x100] sm:$0xff] %vm576_vm8, %v552_v6 }
 0x20e   :  { %1246 = vst.msk [vmem:[#allocation2 + $0x98] sm:$0xff] %vm810_vm10, %v1199_v56 }
 0x210   :  { %v1097_v18 = vpop.permute.xlu1 %1096 }
 0x211   :  { %v969_v38 = vpop.permute.xlu0 %968  ;;  %1137 = vst.msk [vmem:[#allocation2 + $0x108] sm:$0xff] %vm693_vm9, %v1097_v18 }
 0x212   :  { %1015 = vst.msk [vmem:[#allocation2 + $0xa8] sm:$0xff] %vm576_vm8, %v969_v38 }
 0x214   :  { %v669_v40 = vpop.permute.xlu1 %668 }
 0x215   :  { %v1085_v24 = vpop.permute.xlu0 %1084  ;;  %v1275_v21 = vld [vmem:[#allocation2 + $0x98] sm:$0xff]  ;;  %710 = vst.msk [vmem:[#allocation2 + $0x100] sm:$0xff] %vm693_vm9, %v669_v40 }
 0x216   :  { %1131 = vst.msk [vmem:[#allocation2 + $0xa8] sm:$0xff] %vm693_vm9, %v1085_v24  ;;  %1442 = vmatprep.mubr.f32.mxu1 %v1275_v21 }
 0x217   :  { %1443 = vmatmul.mubr.f32.gmra.mrb[2].mxu1 %v1274_v4 }
 0x218   :  { %v1213_v41 = vpop.permute.xlu1 %1212 }
 0x219   :  { %v1201_v33 = vpop.permute.xlu0 %1200  ;;  %1253 = vst.msk [vmem:[#allocation2 + $0x108] sm:$0xff] %vm810_vm10, %v1213_v41 }
 0x21a   :  { %1247 = vst.msk [vmem:[#allocation2 + $0xa8] sm:$0xff] %vm810_vm10, %v1201_v33 }
 0x21c   :  { %v786_v44 = vpop.permute.xlu1 %785 }
 0x21d   :  { %v649_v62 = vpop.permute.xlu0 %648  ;;  %827 = vst.msk [vmem:[#allocation2 + $0x100] sm:$0xff] %vm810_vm10, %v786_v44 }
 0x21e   :  { %700 = vst.msk [vmem:[#allocation2 + $0x60] sm:$0xff] %vm693_vm9, %v649_v62 }
 0x220   :  { %v983_v10 = vpop.permute.xlu1 %982  ;;  %v1289_v51 = vld [vmem:[#allocation2 + $0x108] sm:$0xff] }
 0x221   :  { %v1193_v12 = vpop.permute.xlu0 %1192  ;;  %v1277_v37 = vld [vmem:[#allocation2 + $0xa8] sm:$0xff]  ;;  %1022 = vst.msk [vmem:[#allocation2 + $0x118] sm:$0xff] %vm576_vm8, %v983_v10 }
 0x222   :  { %1243 = vst.msk [vmem:[#allocation2 + $0x68] sm:$0xff] %vm810_vm10, %v1193_v12  ;;  %1447 = vmatprep.mubr.f32.mxu1 %v1277_v37 }
 0x223   :  { %1448 = vmatmul.mubr.f32.gmra.mrb[4].mxu1 %v1276_v42 }
 0x224   :  { %1452 = vmatprep.mubr.f32.mxu1 %v1279_v3  ;;  %v554_v43 = vpop.permute.xlu1 %553  ;;  %v1288_v27 = vld [vmem:[#allocation2 + $0x100] sm:$0xff] }
 0x225   :  { %v766_v61 = vpop.permute.xlu0 %765  ;;  %594 = vst.msk [vmem:[#allocation2 + $0x110] sm:$0xff] %vm576_vm8, %v554_v43 }
 0x226   :  { %817 = vst.msk [vmem:[#allocation2 + $0x60] sm:$0xff] %vm810_vm10, %v766_v61 }
 0x227   :  { %1453 = vmatmul.mubr.f32.gmra.mrb[6].mxu1 %v1278_v20 }
 0x228   :  { %1457 = vmatprep.mubr.f32.mxu1 %v1281_v53  ;;  %v1099_v60 = vpop.permute.xlu1 %1098 }
 0x229   :  { %v963_v23 = vpop.permute.xlu0 %962  ;;  %v1269_v22 = vld [vmem:[#allocation2 + $0x68] sm:$0xff]  ;;  %1138 = vst.msk [vmem:[#allocation2 + $0x118] sm:$0xff] %vm693_vm9, %v1099_v60 }
 0x22a   :  { %1012 = vst.msk [vmem:[#allocation2 + $0x78] sm:$0xff] %vm576_vm8, %v963_v23  ;;  %1427 = vmatprep.mubr.f32.mxu0 %v1269_v22 }
 0x22b   :  { %1458 = vmatmul.mubr.f32.gmra.mrb[8].mxu1 %v1280_v25 }
 0x22c   :  { %1462 = vmatprep.mubr.f32.mxu1 %v1283_v52  ;;  %v671_v2 = vpop.permute.xlu1 %670 }
 0x22d   :  { %v534_v14 = vpop.permute.xlu0 %533  ;;  %v1268_v1 = vld [vmem:[#allocation2 + $0x60] sm:$0xff]  ;;  %711 = vst.msk [vmem:[#allocation2 + $0x110] sm:$0xff] %vm693_vm9, %v671_v2 }
 0x22e   :  { %584 = vst.msk [vmem:[#allocation2 + $0x70] sm:$0xff] %vm576_vm8, %v534_v14  ;;  %1428 = vmatmul.mubr.f32.gmra.mrb[32].mxu0 %v1268_v1 }
 0x22f   :  { %1463 = vmatmul.mubr.f32.gmra.mrb[10].mxu1 %v1282_v35 }
 0x230   :  { %1467 = vmatprep.mubr.f32.mxu1 %v1285_v0  ;;  %v1215_v49 = vpop.permute.xlu1 %1214 }
 0x231   :  { %v1079_v55 = vpop.permute.xlu0 %1078  ;;  %1254 = vst.msk [vmem:[#allocation2 + $0x118] sm:$0xff] %vm810_vm10, %v1215_v49 }
 0x232   :  { %1128 = vst.msk [vmem:[#allocation2 + $0x78] sm:$0xff] %vm693_vm9, %v1079_v55 }
 0x233   :  { %1468 = vmatmul.mubr.f32.gmra.mrb[12].mxu1 %v1284_v32 }
 0x234   :  { %1472 = vmatprep.mubr.f32.mxu1 %v1287_v26  ;;  %v788_v34 = vpop.permute.xlu1 %787 }
 0x235   :  { %v651_v17 = vpop.permute.xlu0 %650  ;;  %828 = vst.msk [vmem:[#allocation2 + $0x110] sm:$0xff] %vm810_vm10, %v788_v34 }
 0x236   :  { %701 = vst.msk [vmem:[#allocation2 + $0x70] sm:$0xff] %vm693_vm9, %v651_v17 }
 0x237   :  { %1473 = vmatmul.mubr.f32.gmra.mrb[14].mxu1 %v1286_v5 }
 0x238   :  { %1477 = vmatprep.mubr.f32.mxu1 %v1289_v51  ;;  %v985_v28 = vpop.permute.xlu1 %984  ;;  %v1291_v11 = vld [vmem:[#allocation2 + $0x118] sm:$0xff] }
 0x239   :  { %v1195_v19 = vpop.permute.xlu0 %1194  ;;  %1023 = vst.msk [vmem:[#allocation2 + $0x128] sm:$0xff] %vm576_vm8, %v985_v28 }
 0x23a   :  { %1244 = vst.msk [vmem:[#allocation2 + $0x78] sm:$0xff] %vm810_vm10, %v1195_v19 }
 0x23b   :  { %1478 = vmatmul.mubr.f32.gmra.mrb[16].mxu1 %v1288_v27 }
 0x23c   :  { %1482 = vmatprep.mubr.f32.mxu1 %v1291_v11  ;;  %v556_v7 = vpop.permute.xlu1 %555  ;;  %v1290_v47 = vld [vmem:[#allocation2 + $0x110] sm:$0xff] }
 0x23d   :  { %v768_v46 = vpop.permute.xlu0 %767  ;;  %595 = vst.msk [vmem:[#allocation2 + $0x120] sm:$0xff] %vm576_vm8, %v556_v7 }
 0x23e   :  { %818 = vst.msk [vmem:[#allocation2 + $0x70] sm:$0xff] %vm810_vm10, %v768_v46 }
 0x23f   :  { %1483 = vmatmul.mubr.f32.gmra.mrb[18].mxu1 %v1290_v47 }
 0x240   :  { %v1101_v30 = vpop.permute.xlu1 %1100 }
 0x241   :  { %v1271_v63 = vld [vmem:[#allocation2 + $0x78] sm:$0xff]  ;;  %1139 = vst.msk [vmem:[#allocation2 + $0x128] sm:$0xff] %vm693_vm9, %v1101_v30 }
 0x242   :  { %1432 = vmatprep.mubr.f32.mxu0 %v1271_v63 }
 0x244   :  { %v673_v13 = vpop.permute.xlu1 %672 }
 0x245   :  { %v1270_v58 = vld [vmem:[#allocation2 + $0x70] sm:$0xff]  ;;  %712 = vst.msk [vmem:[#allocation2 + $0x120] sm:$0xff] %vm693_vm9, %v673_v13 }
 0x246   :  { %1433 = vmatmul.mubr.f32.gmra.mrb[34].mxu0 %v1270_v58 }
 0x248   :  { %v1217_v45 = vpop.permute.xlu1 %1216 }
 0x249   :  { %1255 = vst.msk [vmem:[#allocation2 + $0x128] sm:$0xff] %vm810_vm10, %v1217_v45 }
 0x24c   :  { %v790_v16 = vpop.permute.xlu1 %789 }
 0x24d   :  { %v1399_v9 = vpop.f32.mrb[20].mxu0  ;;  %829 = vst.msk [vmem:[#allocation2 + $0x120] sm:$0xff] %vm810_vm10, %v790_v16 }
 0x24e   :  { %v1400_v54 = vadd.f32 %v3080_v50, %v1399_v9  ;;  %v1401_v39 = vpop.f32.mrb[21].mxu0 }
 0x250   :  { %v1493_v15 = vmax.f32 %v1400_v54, 0.0  ;;  %v1293_v29 = vld [vmem:[#allocation2 + $0x128] sm:$0xff] }
 0x251   :  { %1487 = vmatprep.mubr.f32.mxu1 %v1293_v29 }
 0x252   :  { %1512 = vst.msk [vmem:[%s3184_s6] sm:$0xff] %vm54_vm0, %v1493_v15 }
 0x254   :  { %v1292_v8 = vld [vmem:[#allocation2 + $0x120] sm:$0xff] }
 0x255   :  { %1488 = vmatmul.mubr.f32.gmra.mrb[20].mxu1 %v1292_v8 }
 0x265   :  { %v1404_v59 = vpop.f32.mrb[22].mxu0 }
 0x266   :  { %v1405_v57 = vadd.f32 %v3080_v50, %v1404_v59  ;;  %v1406_v36 = vpop.f32.mrb[23].mxu0 }
 0x268   :  { %v1494_v48 = vmax.f32 %v1405_v57, 0.0 }
 0x26a   :  { %1513 = vst.msk [vmem:[%s3184_s6 + $0x8] sm:$0xff] %vm54_vm0, %v1494_v48 }
 0x27d   :  { %v1409_v31 = vpop.f32.mrb[24].mxu0 }
 0x27e   :  { %v1410_v6 = vadd.f32 %v3080_v50, %v1409_v31  ;;  %v1411_v56 = vpop.f32.mrb[25].mxu0 }
 0x280   :  { %v1495_v18 = vmax.f32 %v1410_v6, 0.0 }
 0x282   :  { %1514 = vst.msk [vmem:[%s3184_s6 + $0x10] sm:$0xff] %vm54_vm0, %v1495_v18 }
 0x295   :  { %v1414_v38 = vpop.f32.mrb[26].mxu0 }
 0x296   :  { %v1415_v40 = vadd.f32 %v3080_v50, %v1414_v38  ;;  %v1416_v24 = vpop.f32.mrb[27].mxu0 }
 0x298   :  { %v1496_v21 = vmax.f32 %v1415_v40, 0.0 }
 0x29a   :  { %1515 = vst.msk [vmem:[%s3184_s6 + $0x18] sm:$0xff] %vm54_vm0, %v1496_v21 }
 0x2ad   :  { %v1419_v4 = vpop.f32.mrb[28].mxu0 }
 0x2ae   :  { %v1420_v41 = vadd.f32 %v3080_v50, %v1419_v4  ;;  %v1421_v33 = vpop.f32.mrb[29].mxu0 }
 0x2b0   :  { %v1497_v44 = vmax.f32 %v1420_v41, 0.0 }
 0x2b2   :  { %1516 = vst.msk [vmem:[%s3184_s6 + $0x20] sm:$0xff] %vm54_vm0, %v1497_v44 }
 0x2c5   :  { %v1424_v62 = vpop.f32.mrb[30].mxu0 }
 0x2c6   :  { %v1425_v10 = vadd.f32 %v3080_v50, %v1424_v62  ;;  %v1426_v12 = vpop.f32.mrb[31].mxu0 }
 0x2c8   :  { %v1498_v37 = vmax.f32 %v1425_v10, 0.0 }
 0x2ca   :  { %1517 = vst.msk [vmem:[%s3184_s6 + $0x28] sm:$0xff] %vm54_vm0, %v1498_v37 }
 0x2de   :  { %v1439_v42 = vpop.f32.mrb[0].mxu1 }
 0x2df   :  { %v1440_v3 = vadd.f32 %v3080_v50, %v1439_v42  ;;  %v1441_v43 = vpop.f32.mrb[1].mxu1 }
 0x2e1   :  { %v1501_v61 = vmax.f32 %v1440_v3, 0.0 }
 0x2e3   :  { %1520 = vst.msk [vmem:[%s3184_s6 + $0x40] sm:$0xff] %vm54_vm0, %v1501_v61 }
 0x2ea   :  { %v1444_v20 = vpop.f32.mrb[2].mxu1 }
 0x2eb   :  { %v1445_v53 = vadd.f32 %v3080_v50, %v1444_v20  ;;  %v1446_v60 = vpop.f32.mrb[3].mxu1 }
 0x2ed   :  { %v1502_v23 = vmax.f32 %v1445_v53, 0.0 }
 0x2ef   :  { %1521 = vst.msk [vmem:[%s3184_s6 + $0x48] sm:$0xff] %vm54_vm0, %v1502_v23 }
 0x2f6   :  { %v1449_v22 = vpop.f32.mrb[4].mxu1 }
 0x2f7   :  { %v1450_v25 = vadd.f32 %v3080_v50, %v1449_v22  ;;  %v1451_v52 = vpop.f32.mrb[5].mxu1 }
 0x2f9   :  { %v1503_v2 = vmax.f32 %v1450_v25, 0.0 }
 0x2fa   :  { %v1454_v14 = vpop.f32.mrb[6].mxu1 }
 0x2fb   :  { %1522 = vst.msk [vmem:[%s3184_s6 + $0x50] sm:$0xff] %vm54_vm0, %v1503_v2  ;;  %v1455_v1 = vadd.f32 %v3080_v50, %v1454_v14  ;;  %v1456_v35 = vpop.f32.mrb[7].mxu1 }
 0x2fd   :  { %v1504_v0 = vmax.f32 %v1455_v1, 0.0 }
 0x2fe   :  { %v1459_v49 = vpop.f32.mrb[8].mxu1 }
 0x2ff   :  { %1523 = vst.msk [vmem:[%s3184_s6 + $0x58] sm:$0xff] %vm54_vm0, %v1504_v0  ;;  %v1460_v55 = vadd.f32 %v3080_v50, %v1459_v49  ;;  %v1461_v32 = vpop.f32.mrb[9].mxu1 }
 0x301   :  { %v1505_v26 = vmax.f32 %v1460_v55, 0.0  ;;  %v1429_v34 = vpop.f32.mrb[32].mxu0 }
 0x302   :  { %v1430_v17 = vadd.f32 %v3080_v50, %v1429_v34  ;;  %v1431_v5 = vpop.f32.mrb[33].mxu0  ;;  %v1464_v51 = vpop.f32.mrb[10].mxu1 }
 0x303   :  { %1524 = vst.msk [vmem:[%s3184_s6 + $0x60] sm:$0xff] %vm54_vm0, %v1505_v26  ;;  %v1465_v28 = vadd.f32 %v3080_v50, %v1464_v51  ;;  %v1466_v19 = vpop.f32.mrb[11].mxu1 }
 0x304   :  { %v1499_v27 = vmax.f32 %v1430_v17, 0.0 }
 0x305   :  { %v1506_v11 = vmax.f32 %v1465_v28, 0.0 }
 0x306   :  { %1518 = vst.msk [vmem:[%s3184_s6 + $0x30] sm:$0xff] %vm54_vm0, %v1499_v27  ;;  %v1469_v7 = vpop.f32.mrb[12].mxu1 }
 0x307   :  { %1525 = vst.msk [vmem:[%s3184_s6 + $0x68] sm:$0xff] %vm54_vm0, %v1506_v11  ;;  %v1470_v46 = vadd.f32 %v3080_v50, %v1469_v7  ;;  %v1471_v47 = vpop.f32.mrb[13].mxu1 }
 0x309   :  { %v1507_v30 = vmax.f32 %v1470_v46, 0.0 }
 0x30a   :  { %v1474_v63 = vpop.f32.mrb[14].mxu1 }
 0x30b   :  { %1526 = vst.msk [vmem:[%s3184_s6 + $0x70] sm:$0xff] %vm54_vm0, %v1507_v30  ;;  %v1475_v13 = vadd.f32 %v3080_v50, %v1474_v63  ;;  %v1476_v58 = vpop.f32.mrb[15].mxu1 }
 0x30d   :  { %v1508_v45 = vmax.f32 %v1475_v13, 0.0 }
 0x30e   :  { %v1479_v16 = vpop.f32.mrb[16].mxu1 }
 0x30f   :  { %1527 = vst.msk [vmem:[%s3184_s6 + $0x78] sm:$0xff] %vm54_vm0, %v1508_v45  ;;  %v1480_v9 = vadd.f32 %v3080_v50, %v1479_v16  ;;  %v1481_v54 = vpop.f32.mrb[17].mxu1 }
 0x311   :  { %v1509_v39 = vmax.f32 %v1480_v9, 0.0 }
 0x312   :  { %v1484_v15 = vpop.f32.mrb[18].mxu1 }
 0x313   :  { %1528 = vst.msk [vmem:[%s3184_s6 + $0x80] sm:$0xff] %vm54_vm0, %v1509_v39  ;;  %v1485_v29 = vadd.f32 %v3080_v50, %v1484_v15  ;;  %v1486_v8 = vpop.f32.mrb[19].mxu1 }
 0x315   :  { %v1510_v59 = vmax.f32 %v1485_v29, 0.0 }
 0x317   :  { %1529 = vst.msk [vmem:[%s3184_s6 + $0x88] sm:$0xff] %vm54_vm0, %v1510_v59 }
 0x319   :  { %v1434_v57 = vpop.f32.mrb[34].mxu0 }
 0x31a   :  { %v1435_v36 = vadd.f32 %v3080_v50, %v1434_v57  ;;  %v1436_v48 = vpop.f32.mrb[35].mxu0 }
 0x31c   :  { %v1500_v31 = vmax.f32 %v1435_v36, 0.0 }
 0x31e   :  { %1519 = vst.msk [vmem:[%s3184_s6 + $0x38] sm:$0xff] %vm54_vm0, %v1500_v31 }
 0x328   :  { %v1489_v6 = vpop.f32.mrb[20].mxu1 }
 0x329   :  { %v1490_v56 = vadd.f32 %v3080_v50, %v1489_v6  ;;  %v1491_v18 = vpop.f32.mrb[21].mxu1 }
 0x32b   :  { %v1511_v38 = vmax.f32 %v1490_v56, 0.0 }
 0x32d   :  { %1530 = vst.msk [vmem:[%s3184_s6 + $0x90] sm:$0xff] %vm54_vm0, %v1511_v38 }

</bundles_post_ra>
